<compile_context>
chip_gen: v5e
topology: v5e:2x2
jax: 0.10.0
libtpu: 0.0.40
codegen_flags: <defaults>
</compile_context>

<pallas_src>
import functools

import jax
import jax.numpy as jnp
from jax.experimental import pallas as pl
from jax.experimental.pallas import tpu as pltpu


def _round_up(x, m):
    return (x + m - 1) // m * m


def _layer_dims(input_dim):
    # encoder: d->200->100->50->10->5 ; decoder: 5->10->50->100->200->d
    return [input_dim, 200, 100, 50, 10, 5, 10, 50, 100, 200, input_dim]


# ---------------------------------------------------------------------------
# Kernel
# ---------------------------------------------------------------------------
def mlp_kernel(x_ref, w_ref, b_ref, o_ref, *, layer_specs):
    """Whole (folded) autoencoder forward on one batch tile.

    layer_specs: static tuple of (in_pad, out_pad, col_off, relu) per layer.
    Weights live in one packed bf16 slab `w_ref` (rows 0:in_pad, cols off:off+out_pad),
    biases in one packed f32 row `b_ref` at the same column offsets.

    The batch tile is split into two independent halves that are interleaved through the
    unrolled layer chain, so the VPU epilogue of one half overlaps MXU work of the other.
    """
    half = x_ref.shape[0] // 2                      # tile is a multiple of 32 -> half % 16 == 0
    n_layers = len(layer_specs)

    ha = x_ref[0:half, :]                           # bf16 activations, lane-dense
    hb = x_ref[half:, :]
    for idx, (in_pad, out_pad, off, relu) in enumerate(layer_specs):
        w = w_ref[0:in_pad, off:off + out_pad]      # bf16, lane/sublane aligned slice
        bias = b_ref[0:1, off:off + out_pad]        # f32

        # MXU matmuls with f32 accumulation; f32 bias add / ReLU epilogue.
        acc_a = jnp.dot(ha, w, preferred_element_type=jnp.float32) + bias
        acc_b = jnp.dot(hb, w, preferred_element_type=jnp.float32) + bias
        if relu:
            acc_a = jnp.maximum(acc_a, 0.0)
            acc_b = jnp.maximum(acc_b, 0.0)

        if idx == n_layers - 1:
            o_ref[0:half, :] = acc_a                # f32, lane-dense store
            o_ref[half:, :] = acc_b
        else:
            ha = acc_a.astype(w_ref.dtype)          # carry inter-layer activations in bf16
            hb = acc_b.astype(w_ref.dtype)


# ---------------------------------------------------------------------------
# Parameter init / packing
# ---------------------------------------------------------------------------
def init_params(key, input_dim, dtype=jnp.float32):
    """Deterministic PyTorch-style init: U(-1/sqrt(fan_in), 1/sqrt(fan_in))."""
    dims = _layer_dims(input_dim)
    params = []
    for i in range(len(dims) - 1):
        fan_in, fan_out = dims[i], dims[i + 1]
        key, kw, kb = jax.random.split(key, 3)
        bound = 1.0 / jnp.sqrt(jnp.asarray(fan_in, dtype=jnp.float32))
        w = jax.random.uniform(kw, (fan_in, fan_out), dtype, -bound, bound)
        b = jax.random.uniform(kb, (1, fan_out), dtype, -bound, bound)
        params += [w, b]
    return params


def pack_params(params, weight_dtype=jnp.bfloat16):
    """Fold layers 4/5 and pack all weights/biases into two padded VMEM slabs."""
    ws = [params[2 * i].astype(jnp.float32) for i in range(10)]
    bs = [params[2 * i + 1].astype(jnp.float32) for i in range(10)]

    # Fold Linear(10,5) -> Linear(5,10) (no ReLU in between) into one 10x10 layer.
    # Fold is done in f32 and rounded to bf16 once (intentional approximation).
    w45 = ws[4] @ ws[5]
    b45 = bs[4] @ ws[5] + bs[5]
    ws = ws[:4] + [w45] + ws[6:]
    bs = bs[:4] + [b45] + bs[6:]
    relus = [True] * 8 + [False]          # ReLU after every folded layer except the last

    in_pads = [_round_up(w.shape[0], 128) for w in ws]
    out_pads = [_round_up(w.shape[1], 128) for w in ws]
    max_in_pad = max(in_pads)
    total_cols = sum(out_pads)

    w_packed = jnp.zeros((max_in_pad, total_cols), dtype=weight_dtype)
    b_packed = jnp.zeros((1, total_cols), dtype=jnp.float32)

    layer_specs = []
    off = 0
    for w, b, ip, op, relu in zip(ws, bs, in_pads, out_pads, relus):
        w_packed = w_packed.at[:w.shape[0], off:off + w.shape[1]].set(w.astype(weight_dtype))
        b_packed = b_packed.at[:, off:off + b.shape[1]].set(b)
        layer_specs.append((ip, op, off, relu))
        off += op
    return w_packed, b_packed, tuple(layer_specs)


# ---------------------------------------------------------------------------
# Batch tile selection
# ---------------------------------------------------------------------------
def _choose_batch_tile(batch, block_batch):
    """Pick the batch tile: a multiple of 32 (two bf16 sub-tiles of >=16 rows each),
    capped at block_batch, with >= 2 grid steps whenever the batch is large enough
    (feeds both TensorCores on v7x) while keeping padding (b_pad - batch) small."""
    cap = max(32, _round_up(block_batch, 32))
    b32 = _round_up(batch, 32)
    if b32 <= 64:                         # too small to split into two useful tiles
        return min(b32, cap)
    return min(cap, _round_up(b32, 64) // 2)


# ---------------------------------------------------------------------------
# Wrapper
# ---------------------------------------------------------------------------
def simple_autoencoder_forward(x, params, *, block_batch=512,
                               weight_dtype=jnp.bfloat16):
    batch, d = x.shape
    w_packed, b_packed, layer_specs = pack_params(params, weight_dtype)

    d_pad = _round_up(d, 128)
    tb = _choose_batch_tile(batch, block_batch)
    b_pad = _round_up(batch, tb)

    # Feed the kernel bf16 activations; fuse the cast with the pad and skip the pad
    # entirely when shapes already line up.  Padded columns hit zero weight rows.
    x_bf = x.astype(jnp.bfloat16)
    if batch == b_pad and d == d_pad:
        x_p = x_bf
    else:
        x_p = jnp.zeros((b_pad, d_pad), jnp.bfloat16).at[:batch, :d].set(x_bf)

    kernel = functools.partial(mlp_kernel, layer_specs=layer_specs)
    out = pl.pallas_call(
        kernel,
        out_shape=jax.ShapeDtypeStruct((b_pad, d_pad), jnp.float32),
        grid=(b_pad // tb,),
        in_specs=[
            pl.BlockSpec((tb, d_pad), lambda i: (i, 0)),            # pipelined bf16 activations
            # Constant index_map -> the ~704 KiB packed weight slab / bias row are fetched
            # once and stay VMEM-resident across all grid steps (never re-DMA'd).
            pl.BlockSpec(w_packed.shape, lambda i: (0, 0)),
            pl.BlockSpec(b_packed.shape, lambda i: (0, 0)),
        ],
        out_specs=pl.BlockSpec((tb, d_pad), lambda i: (i, 0)),      # lane-dense f32 output tile
        compiler_params=pltpu.CompilerParams(
            dimension_semantics=("parallel",),                      # megacore on v7x
            vmem_limit_bytes=32 * 1024 * 1024,                      # safe on v5e/v6e/v7x
        ),
    )(x_p, w_packed, b_packed)

    return out[:batch, :d].astype(x.dtype)


# ---------------------------------------------------------------------------
# Pure-JAX reference (original unfolded f32 semantics, matches PyTorch module)
# ---------------------------------------------------------------------------
def reference_forward(x, params):
    h = x.astype(jnp.float32)
    for i in range(10):
        h = h @ params[2 * i] + params[2 * i + 1]
        if i not in (4, 9):          # no ReLU after Linear(10,5) and Linear(200,d)
            h = jnp.maximum(h, 0.0)
    return h.astype(x.dtype)


if __name__ == "__main__":
    input_dim = 64

    key = jax.random.PRNGKey(0)
    key, kx1, kx2 = jax.random.split(key, 3)
    params = init_params(key, input_dim)

    # Test 1: small batch -> single grid step, one half of the tile is padding.
    x1 = jax.random.normal(kx1, (16, input_dim), dtype=jnp.float32)
    out1 = jax.block_until_ready(simple_autoencoder_forward(x1, params))
    ref1 = reference_forward(x1, params)
    assert out1.shape == x1.shape
    assert jnp.allclose(out1, ref1, atol=5e-2, rtol=5e-2), "mismatch vs reference (test 1)"

    # Test 2: batch=96 -> tile chooser picks tb=64, grid=(2,) (parallel axis gets 2 steps),
    # exercising multi-step pipelining, padded tail rows and the two-half interleave.
    x2 = jax.random.normal(kx2, (96, input_dim), dtype=jnp.float32)
    out2 = jax.block_until_ready(simple_autoencoder_forward(x2, params))
    ref2 = reference_forward(x2, params)
    assert out2.shape == x2.shape
    assert jnp.allclose(out2, ref2, atol=5e-2, rtol=5e-2), "mismatch vs reference (test 2)"

    print("KERNEL_OK")
</pallas_src>

<mosaic_0001>
module attributes {stable_mosaic.version = 11 : i64} {
  func.func @mlp_kernel(%arg0: i32, %arg1: memref<32x128xbf16, #tpu.memory_space<vmem>>, %arg2: memref<256x1408xbf16, #tpu.memory_space<vmem>>, %arg3: memref<1x1408xf32, #tpu.memory_space<vmem>>, %arg4: memref<32x128xf32, #tpu.memory_space<vmem>>) attributes {dimension_semantics = [#tpu.dimension_semantics<parallel>], iteration_bounds = array<i64: 1>, scalar_prefetch = 0 : i64, scratch_operands = 0 : i64, tpu.core_type = #tpu.core_type<tc>, window_params = [{transform_indices = @transform_0, window_bounds = array<i64: 32, 128>}, {pipeline_mode = #tpu.pipeline_mode<synchronous>, transform_indices = @transform_1, window_bounds = array<i64: 256, 1408>}, {pipeline_mode = #tpu.pipeline_mode<synchronous>, transform_indices = @transform_2, window_bounds = array<i64: 1, 1408>}, {transform_indices = @transform_3, window_bounds = array<i64: 32, 128>}]} {
    %c0 = arith.constant 0 : index
    %c0_0 = arith.constant 0 : index
    %0 = vector.load %arg1[%c0, %c0_0] : memref<32x128xbf16, #tpu.memory_space<vmem>>, vector<16x128xbf16>
    %c16 = arith.constant 16 : index
    %c0_1 = arith.constant 0 : index
    %1 = vector.load %arg1[%c16, %c0_1] : memref<32x128xbf16, #tpu.memory_space<vmem>>, vector<16x128xbf16>
    %c0_2 = arith.constant 0 : index
    %c0_3 = arith.constant 0 : index
    %2 = vector.load %arg2[%c0_2, %c0_3] : memref<256x1408xbf16, #tpu.memory_space<vmem>>, vector<128x256xbf16>
    %c0_4 = arith.constant 0 : index
    %c0_5 = arith.constant 0 : index
    %3 = vector.load %arg3[%c0_4, %c0_5] : memref<1x1408xf32, #tpu.memory_space<vmem>>, vector<1x256xf32>
    %cst = arith.constant dense<0.000000e+00> : vector<16x256xf32>
    %4 = tpu.matmul %0, %2, %cst {dimension_numbers = #tpu.dot_dimension_numbers<[1], [0], [0], [1], [0, 0, 1, 1], [], []>} : vector<16x128xbf16>, vector<128x256xbf16>, vector<16x256xf32> -> vector<16x256xf32>
    %5 = vector.broadcast %3 : vector<1x256xf32> to vector<16x256xf32>
    %6 = arith.addf %4, %5 : vector<16x256xf32>
    %cst_6 = arith.constant dense<0.000000e+00> : vector<16x256xf32>
    %7 = tpu.matmul %1, %2, %cst_6 {dimension_numbers = #tpu.dot_dimension_numbers<[1], [0], [0], [1], [0, 0, 1, 1], [], []>} : vector<16x128xbf16>, vector<128x256xbf16>, vector<16x256xf32> -> vector<16x256xf32>
    %8 = vector.broadcast %3 : vector<1x256xf32> to vector<16x256xf32>
    %9 = arith.addf %7, %8 : vector<16x256xf32>
    %cst_7 = arith.constant 0.000000e+00 : f32
    %10 = vector.broadcast %cst_7 : f32 to vector<16x256xf32>
    %11 = arith.maximumf %6, %10 : vector<16x256xf32>
    %cst_8 = arith.constant 0.000000e+00 : f32
    %12 = vector.broadcast %cst_8 : f32 to vector<16x256xf32>
    %13 = arith.maximumf %9, %12 : vector<16x256xf32>
    %14 = arith.truncf %11 : vector<16x256xf32> to vector<16x256xbf16>
    %15 = arith.truncf %13 : vector<16x256xf32> to vector<16x256xbf16>
    %c0_9 = arith.constant 0 : index
    %c256 = arith.constant 256 : index
    %16 = vector.load %arg2[%c0_9, %c256] : memref<256x1408xbf16, #tpu.memory_space<vmem>>, vector<256x128xbf16>
    %c0_10 = arith.constant 0 : index
    %c256_11 = arith.constant 256 : index
    %17 = vector.load %arg3[%c0_10, %c256_11] : memref<1x1408xf32, #tpu.memory_space<vmem>>, vector<1x128xf32>
    %cst_12 = arith.constant dense<0.000000e+00> : vector<16x128xf32>
    %18 = tpu.matmul %14, %16, %cst_12 {dimension_numbers = #tpu.dot_dimension_numbers<[1], [0], [0], [1], [0, 0, 1, 1], [], []>} : vector<16x256xbf16>, vector<256x128xbf16>, vector<16x128xf32> -> vector<16x128xf32>
    %19 = vector.broadcast %17 : vector<1x128xf32> to vector<16x128xf32>
    %20 = arith.addf %18, %19 : vector<16x128xf32>
    %cst_13 = arith.constant dense<0.000000e+00> : vector<16x128xf32>
    %21 = tpu.matmul %15, %16, %cst_13 {dimension_numbers = #tpu.dot_dimension_numbers<[1], [0], [0], [1], [0, 0, 1, 1], [], []>} : vector<16x256xbf16>, vector<256x128xbf16>, vector<16x128xf32> -> vector<16x128xf32>
    %22 = vector.broadcast %17 : vector<1x128xf32> to vector<16x128xf32>
    %23 = arith.addf %21, %22 : vector<16x128xf32>
    %cst_14 = arith.constant 0.000000e+00 : f32
    %24 = vector.broadcast %cst_14 : f32 to vector<16x128xf32>
    %25 = arith.maximumf %20, %24 : vector<16x128xf32>
    %cst_15 = arith.constant 0.000000e+00 : f32
    %26 = vector.broadcast %cst_15 : f32 to vector<16x128xf32>
    %27 = arith.maximumf %23, %26 : vector<16x128xf32>
    %28 = arith.truncf %25 : vector<16x128xf32> to vector<16x128xbf16>
    %29 = arith.truncf %27 : vector<16x128xf32> to vector<16x128xbf16>
    %c0_16 = arith.constant 0 : index
    %c384 = arith.constant 384 : index
    %30 = vector.load %arg2[%c0_16, %c384] : memref<256x1408xbf16, #tpu.memory_space<vmem>>, vector<128x128xbf16>
    %c0_17 = arith.constant 0 : index
    %c384_18 = arith.constant 384 : index
    %31 = vector.load %arg3[%c0_17, %c384_18] : memref<1x1408xf32, #tpu.memory_space<vmem>>, vector<1x128xf32>
    %cst_19 = arith.constant dense<0.000000e+00> : vector<16x128xf32>
    %32 = tpu.matmul %28, %30, %cst_19 {dimension_numbers = #tpu.dot_dimension_numbers<[1], [0], [0], [1], [0, 0, 1, 1], [], []>} : vector<16x128xbf16>, vector<128x128xbf16>, vector<16x128xf32> -> vector<16x128xf32>
    %33 = vector.broadcast %31 : vector<1x128xf32> to vector<16x128xf32>
    %34 = arith.addf %32, %33 : vector<16x128xf32>
    %cst_20 = arith.constant dense<0.000000e+00> : vector<16x128xf32>
    %35 = tpu.matmul %29, %30, %cst_20 {dimension_numbers = #tpu.dot_dimension_numbers<[1], [0], [0], [1], [0, 0, 1, 1], [], []>} : vector<16x128xbf16>, vector<128x128xbf16>, vector<16x128xf32> -> vector<16x128xf32>
    %36 = vector.broadcast %31 : vector<1x128xf32> to vector<16x128xf32>
    %37 = arith.addf %35, %36 : vector<16x128xf32>
    %cst_21 = arith.constant 0.000000e+00 : f32
    %38 = vector.broadcast %cst_21 : f32 to vector<16x128xf32>
    %39 = arith.maximumf %34, %38 : vector<16x128xf32>
    %cst_22 = arith.constant 0.000000e+00 : f32
    %40 = vector.broadcast %cst_22 : f32 to vector<16x128xf32>
    %41 = arith.maximumf %37, %40 : vector<16x128xf32>
    %42 = arith.truncf %39 : vector<16x128xf32> to vector<16x128xbf16>
    %43 = arith.truncf %41 : vector<16x128xf32> to vector<16x128xbf16>
    %c0_23 = arith.constant 0 : index
    %c512 = arith.constant 512 : index
    %44 = vector.load %arg2[%c0_23, %c512] : memref<256x1408xbf16, #tpu.memory_space<vmem>>, vector<128x128xbf16>
    %c0_24 = arith.constant 0 : index
    %c512_25 = arith.constant 512 : index
    %45 = vector.load %arg3[%c0_24, %c512_25] : memref<1x1408xf32, #tpu.memory_space<vmem>>, vector<1x128xf32>
    %cst_26 = arith.constant dense<0.000000e+00> : vector<16x128xf32>
    %46 = tpu.matmul %42, %44, %cst_26 {dimension_numbers = #tpu.dot_dimension_numbers<[1], [0], [0], [1], [0, 0, 1, 1], [], []>} : vector<16x128xbf16>, vector<128x128xbf16>, vector<16x128xf32> -> vector<16x128xf32>
    %47 = vector.broadcast %45 : vector<1x128xf32> to vector<16x128xf32>
    %48 = arith.addf %46, %47 : vector<16x128xf32>
    %cst_27 = arith.constant dense<0.000000e+00> : vector<16x128xf32>
    %49 = tpu.matmul %43, %44, %cst_27 {dimension_numbers = #tpu.dot_dimension_numbers<[1], [0], [0], [1], [0, 0, 1, 1], [], []>} : vector<16x128xbf16>, vector<128x128xbf16>, vector<16x128xf32> -> vector<16x128xf32>
    %50 = vector.broadcast %45 : vector<1x128xf32> to vector<16x128xf32>
    %51 = arith.addf %49, %50 : vector<16x128xf32>
    %cst_28 = arith.constant 0.000000e+00 : f32
    %52 = vector.broadcast %cst_28 : f32 to vector<16x128xf32>
    %53 = arith.maximumf %48, %52 : vector<16x128xf32>
    %cst_29 = arith.constant 0.000000e+00 : f32
    %54 = vector.broadcast %cst_29 : f32 to vector<16x128xf32>
    %55 = arith.maximumf %51, %54 : vector<16x128xf32>
    %56 = arith.truncf %53 : vector<16x128xf32> to vector<16x128xbf16>
    %57 = arith.truncf %55 : vector<16x128xf32> to vector<16x128xbf16>
    %c0_30 = arith.constant 0 : index
    %c640 = arith.constant 640 : index
    %58 = vector.load %arg2[%c0_30, %c640] : memref<256x1408xbf16, #tpu.memory_space<vmem>>, vector<128x128xbf16>
    %c0_31 = arith.constant 0 : index
    %c640_32 = arith.constant 640 : index
    %59 = vector.load %arg3[%c0_31, %c640_32] : memref<1x1408xf32, #tpu.memory_space<vmem>>, vector<1x128xf32>
    %cst_33 = arith.constant dense<0.000000e+00> : vector<16x128xf32>
    %60 = tpu.matmul %56, %58, %cst_33 {dimension_numbers = #tpu.dot_dimension_numbers<[1], [0], [0], [1], [0, 0, 1, 1], [], []>} : vector<16x128xbf16>, vector<128x128xbf16>, vector<16x128xf32> -> vector<16x128xf32>
    %61 = vector.broadcast %59 : vector<1x128xf32> to vector<16x128xf32>
    %62 = arith.addf %60, %61 : vector<16x128xf32>
    %cst_34 = arith.constant dense<0.000000e+00> : vector<16x128xf32>
    %63 = tpu.matmul %57, %58, %cst_34 {dimension_numbers = #tpu.dot_dimension_numbers<[1], [0], [0], [1], [0, 0, 1, 1], [], []>} : vector<16x128xbf16>, vector<128x128xbf16>, vector<16x128xf32> -> vector<16x128xf32>
    %64 = vector.broadcast %59 : vector<1x128xf32> to vector<16x128xf32>
    %65 = arith.addf %63, %64 : vector<16x128xf32>
    %cst_35 = arith.constant 0.000000e+00 : f32
    %66 = vector.broadcast %cst_35 : f32 to vector<16x128xf32>
    %67 = arith.maximumf %62, %66 : vector<16x128xf32>
    %cst_36 = arith.constant 0.000000e+00 : f32
    %68 = vector.broadcast %cst_36 : f32 to vector<16x128xf32>
    %69 = arith.maximumf %65, %68 : vector<16x128xf32>
    %70 = arith.truncf %67 : vector<16x128xf32> to vector<16x128xbf16>
    %71 = arith.truncf %69 : vector<16x128xf32> to vector<16x128xbf16>
    %c0_37 = arith.constant 0 : index
    %c768 = arith.constant 768 : index
    %72 = vector.load %arg2[%c0_37, %c768] : memref<256x1408xbf16, #tpu.memory_space<vmem>>, vector<128x128xbf16>
    %c0_38 = arith.constant 0 : index
    %c768_39 = arith.constant 768 : index
    %73 = vector.load %arg3[%c0_38, %c768_39] : memref<1x1408xf32, #tpu.memory_space<vmem>>, vector<1x128xf32>
    %cst_40 = arith.constant dense<0.000000e+00> : vector<16x128xf32>
    %74 = tpu.matmul %70, %72, %cst_40 {dimension_numbers = #tpu.dot_dimension_numbers<[1], [0], [0], [1], [0, 0, 1, 1], [], []>} : vector<16x128xbf16>, vector<128x128xbf16>, vector<16x128xf32> -> vector<16x128xf32>
    %75 = vector.broadcast %73 : vector<1x128xf32> to vector<16x128xf32>
    %76 = arith.addf %74, %75 : vector<16x128xf32>
    %cst_41 = arith.constant dense<0.000000e+00> : vector<16x128xf32>
    %77 = tpu.matmul %71, %72, %cst_41 {dimension_numbers = #tpu.dot_dimension_numbers<[1], [0], [0], [1], [0, 0, 1, 1], [], []>} : vector<16x128xbf16>, vector<128x128xbf16>, vector<16x128xf32> -> vector<16x128xf32>
    %78 = vector.broadcast %73 : vector<1x128xf32> to vector<16x128xf32>
    %79 = arith.addf %77, %78 : vector<16x128xf32>
    %cst_42 = arith.constant 0.000000e+00 : f32
    %80 = vector.broadcast %cst_42 : f32 to vector<16x128xf32>
    %81 = arith.maximumf %76, %80 : vector<16x128xf32>
    %cst_43 = arith.constant 0.000000e+00 : f32
    %82 = vector.broadcast %cst_43 : f32 to vector<16x128xf32>
    %83 = arith.maximumf %79, %82 : vector<16x128xf32>
    %84 = arith.truncf %81 : vector<16x128xf32> to vector<16x128xbf16>
    %85 = arith.truncf %83 : vector<16x128xf32> to vector<16x128xbf16>
    %c0_44 = arith.constant 0 : index
    %c896 = arith.constant 896 : index
    %86 = vector.load %arg2[%c0_44, %c896] : memref<256x1408xbf16, #tpu.memory_space<vmem>>, vector<128x128xbf16>
    %c0_45 = arith.constant 0 : index
    %c896_46 = arith.constant 896 : index
    %87 = vector.load %arg3[%c0_45, %c896_46] : memref<1x1408xf32, #tpu.memory_space<vmem>>, vector<1x128xf32>
    %cst_47 = arith.constant dense<0.000000e+00> : vector<16x128xf32>
    %88 = tpu.matmul %84, %86, %cst_47 {dimension_numbers = #tpu.dot_dimension_numbers<[1], [0], [0], [1], [0, 0, 1, 1], [], []>} : vector<16x128xbf16>, vector<128x128xbf16>, vector<16x128xf32> -> vector<16x128xf32>
    %89 = vector.broadcast %87 : vector<1x128xf32> to vector<16x128xf32>
    %90 = arith.addf %88, %89 : vector<16x128xf32>
    %cst_48 = arith.constant dense<0.000000e+00> : vector<16x128xf32>
    %91 = tpu.matmul %85, %86, %cst_48 {dimension_numbers = #tpu.dot_dimension_numbers<[1], [0], [0], [1], [0, 0, 1, 1], [], []>} : vector<16x128xbf16>, vector<128x128xbf16>, vector<16x128xf32> -> vector<16x128xf32>
    %92 = vector.broadcast %87 : vector<1x128xf32> to vector<16x128xf32>
    %93 = arith.addf %91, %92 : vector<16x128xf32>
    %cst_49 = arith.constant 0.000000e+00 : f32
    %94 = vector.broadcast %cst_49 : f32 to vector<16x128xf32>
    %95 = arith.maximumf %90, %94 : vector<16x128xf32>
    %cst_50 = arith.constant 0.000000e+00 : f32
    %96 = vector.broadcast %cst_50 : f32 to vector<16x128xf32>
    %97 = arith.maximumf %93, %96 : vector<16x128xf32>
    %98 = arith.truncf %95 : vector<16x128xf32> to vector<16x128xbf16>
    %99 = arith.truncf %97 : vector<16x128xf32> to vector<16x128xbf16>
    %c0_51 = arith.constant 0 : index
    %c1024 = arith.constant 1024 : index
    %100 = vector.load %arg2[%c0_51, %c1024] : memref<256x1408xbf16, #tpu.memory_space<vmem>>, vector<128x256xbf16>
    %c0_52 = arith.constant 0 : index
    %c1024_53 = arith.constant 1024 : index
    %101 = vector.load %arg3[%c0_52, %c1024_53] : memref<1x1408xf32, #tpu.memory_space<vmem>>, vector<1x256xf32>
    %cst_54 = arith.constant dense<0.000000e+00> : vector<16x256xf32>
    %102 = tpu.matmul %98, %100, %cst_54 {dimension_numbers = #tpu.dot_dimension_numbers<[1], [0], [0], [1], [0, 0, 1, 1], [], []>} : vector<16x128xbf16>, vector<128x256xbf16>, vector<16x256xf32> -> vector<16x256xf32>
    %103 = vector.broadcast %101 : vector<1x256xf32> to vector<16x256xf32>
    %104 = arith.addf %102, %103 : vector<16x256xf32>
    %cst_55 = arith.constant dense<0.000000e+00> : vector<16x256xf32>
    %105 = tpu.matmul %99, %100, %cst_55 {dimension_numbers = #tpu.dot_dimension_numbers<[1], [0], [0], [1], [0, 0, 1, 1], [], []>} : vector<16x128xbf16>, vector<128x256xbf16>, vector<16x256xf32> -> vector<16x256xf32>
    %106 = vector.broadcast %101 : vector<1x256xf32> to vector<16x256xf32>
    %107 = arith.addf %105, %106 : vector<16x256xf32>
    %cst_56 = arith.constant 0.000000e+00 : f32
    %108 = vector.broadcast %cst_56 : f32 to vector<16x256xf32>
    %109 = arith.maximumf %104, %108 : vector<16x256xf32>
    %cst_57 = arith.constant 0.000000e+00 : f32
    %110 = vector.broadcast %cst_57 : f32 to vector<16x256xf32>
    %111 = arith.maximumf %107, %110 : vector<16x256xf32>
    %112 = arith.truncf %109 : vector<16x256xf32> to vector<16x256xbf16>
    %113 = arith.truncf %111 : vector<16x256xf32> to vector<16x256xbf16>
    %c0_58 = arith.constant 0 : index
    %c1280 = arith.constant 1280 : index
    %114 = vector.load %arg2[%c0_58, %c1280] : memref<256x1408xbf16, #tpu.memory_space<vmem>>, vector<256x128xbf16>
    %c0_59 = arith.constant 0 : index
    %c1280_60 = arith.constant 1280 : index
    %115 = vector.load %arg3[%c0_59, %c1280_60] : memref<1x1408xf32, #tpu.memory_space<vmem>>, vector<1x128xf32>
    %cst_61 = arith.constant dense<0.000000e+00> : vector<16x128xf32>
    %116 = tpu.matmul %112, %114, %cst_61 {dimension_numbers = #tpu.dot_dimension_numbers<[1], [0], [0], [1], [0, 0, 1, 1], [], []>} : vector<16x256xbf16>, vector<256x128xbf16>, vector<16x128xf32> -> vector<16x128xf32>
    %117 = vector.broadcast %115 : vector<1x128xf32> to vector<16x128xf32>
    %118 = arith.addf %116, %117 : vector<16x128xf32>
    %cst_62 = arith.constant dense<0.000000e+00> : vector<16x128xf32>
    %119 = tpu.matmul %113, %114, %cst_62 {dimension_numbers = #tpu.dot_dimension_numbers<[1], [0], [0], [1], [0, 0, 1, 1], [], []>} : vector<16x256xbf16>, vector<256x128xbf16>, vector<16x128xf32> -> vector<16x128xf32>
    %120 = vector.broadcast %115 : vector<1x128xf32> to vector<16x128xf32>
    %121 = arith.addf %119, %120 : vector<16x128xf32>
    %c0_63 = arith.constant 0 : index
    %c0_64 = arith.constant 0 : index
    %122 = vector.load %arg4[%c0_63, %c0_64] : memref<32x128xf32, #tpu.memory_space<vmem>>, vector<16x128xf32>
    tpu.vector_store %arg4[%c0_63, %c0_64], %118 {strides = array<i32>} : memref<32x128xf32, #tpu.memory_space<vmem>>, vector<16x128xf32>,
    %c16_65 = arith.constant 16 : index
    %c0_66 = arith.constant 0 : index
    %123 = vector.load %arg4[%c16_65, %c0_66] : memref<32x128xf32, #tpu.memory_space<vmem>>, vector<16x128xf32>
    tpu.vector_store %arg4[%c16_65, %c0_66], %121 {strides = array<i32>} : memref<32x128xf32, #tpu.memory_space<vmem>>, vector<16x128xf32>,
    return
  }
  func.func @transform_0(%arg0: i32) -> (i32, i32) {
    %c0_i32 = arith.constant 0 : i32
    %c0_i32_0 = arith.constant 0 : i32
    return %arg0, %c0_i32 : i32, i32
  }
  func.func @transform_1(%arg0: i32) -> (i32, i32) {
    %c0_i32 = arith.constant 0 : i32
    %c0_i32_0 = arith.constant 0 : i32
    %c0_i32_1 = arith.constant 0 : i32
    return %c0_i32, %c0_i32_0 : i32, i32
  }
  func.func @transform_2(%arg0: i32) -> (i32, i32) {
    %c0_i32 = arith.constant 0 : i32
    %c0_i32_0 = arith.constant 0 : i32
    %c0_i32_1 = arith.constant 0 : i32
    return %c0_i32, %c0_i32_0 : i32, i32
  }
  func.func @transform_3(%arg0: i32) -> (i32, i32) {
    %c0_i32 = arith.constant 0 : i32
    %c0_i32_0 = arith.constant 0 : i32
    return %arg0, %c0_i32 : i32, i32
  }
}

</mosaic_0001>

<bundles_post_ra>
// kernel: tpu_custom_call.1
= control target key start
LH: loop header
LB: loop body
LE: loop exit
PB: predicated region body
PF: predicated region fallthrough
CT: control target
= control target key end

     0   :  { %8 = vsyncpa [#allocation3], 0  ;;  %s2023_s0 = inlined_call_operand.hbm [shape: bf16[32,128], index: 0, kind: input, shape index: {}]   ;;  %s2024_s1 = inlined_call_operand.hbm [shape: bf16[256,1408], index: 1, kind: input, shape index: {}]   ;;  %s2025_s2 = inlined_call_operand.hbm [shape: f32[1,1408], index: 2, kind: input, shape index: {}]   ;;  %s2026_s3 = inlined_call_operand.hbm [shape: f32[32,128], index: 3, kind: output, shape index: {}]  }
   0x1   :  { %9 = vsyncpa [#allocation6], 0  ;;  %s28_s14 = sshll.u32 %s2024_s1, 4  ;;  %s29_s14 = int_to_ptr.hbm [resolvable:$true] %s28_s14 }
   0x2   :  { %10 = vsyncpa [#allocation4], 0  ;;  %s1981_s15 = smov [#allocation5]   ;;  %s15_s19 = sshll.u32 %s2023_s0, 4  ;;  %s16_s19 = int_to_ptr.hbm [resolvable:$true] %s15_s19 }
   0x3   :  { %s30_s16 = sshll.u32 %s1981_s15, 4  ;;  %s1982_s20 = smov 704   ;;  %s31_s16 = int_to_ptr.vmem [resolvable:$true] %s30_s16 }
   0x4   :  { %s1983_s21 = smov 44   ;;  %s1984_s22 = smov [#allocation2]  }
   0x5   :  { %36 = dma.hbm_to_vmem [thread:$0]  %s29_s14, 22528, %s31_s16, [#allocation6], %s1982_s20, %s1982_s20, %s1983_s21  }
   0x6   :  { %s17_s23 = sshll.u32 %s1984_s22, 4  ;;  %s1985_s24 = smov 64   ;;  %s18_s23 = int_to_ptr.vmem [resolvable:$true] %s17_s23 }
   0x7   :  { %s1986_s25 = smov 4   ;;  %s42_s27 = sshll.u32 %s2025_s2, 4  ;;  %s43_s27 = int_to_ptr.hbm [resolvable:$true] %s42_s27 }
   0x8   :  { %23 = dma.hbm_to_vmem [thread:$0]  %s16_s19, 256, %s18_s23, [#allocation3], %s1985_s24, %s1985_s24, %s1986_s25  }
   0x9   :  { %s1987_s28 = smov [#allocation7]  }
   0xa   :  { %s44_s29 = sshll.u32 %s1987_s28, 4  ;;  %s45_s29 = int_to_ptr.vmem [resolvable:$true] %s44_s29 }
   0xb   :  { %47 = dma.hbm_to_vmem [thread:$0]  %s43_s27, 176, %s45_s29, [#allocation6]  }
   0xc   :  { %1975 = dma.done.wait [#allocation3], 256  }
   0xd   :  { %1976 = vsyncadd [#allocation3], 4294967040 }
   0xe   :  { %1977 = dma.done.wait [#allocation6], 22704  }
   0xf   :  { %1978 = vsyncadd [#allocation6], 4294944592  ;;  %v1394_v0 = vld [vmem:[#allocation5 + $0x268] sm:$0xf]  ;;  %v1773_v1 = vld [vmem:[#allocation5 + $0x290] sm:$0xf0] }
  0x10   :  { %v1772_v2 = vld [vmem:[#allocation5 + $0x26c] sm:$0xf]  ;;  %v1395_v3 = vor.u32 %v1773_v1, %v1394_v0  ;;  %v1396_v4 = vld [vmem:[#allocation5 + $0x294] sm:$0xf0]  ;;  %v1386_v5 = vld [vmem:[#allocation5 + $0x210] sm:$0xf] }
  0x11   :  { %v1771_v6 = vld [vmem:[#allocation5 + $0x238] sm:$0xf0]  ;;  %v1399_v7 = vor.u32 %v1772_v2, %v1396_v4  ;;  %v1770_v8 = vld [vmem:[#allocation5 + $0x214] sm:$0xf]  ;;  %v1388_v9 = vld [vmem:[#allocation5 + $0x23c] sm:$0xf0] }
  0x12   :  { %172 = vmatpush.bf16.msra.mxu0 %v1395_v3  ;;  %206 = vmatpush.bf16.msra.mxu2 %v1395_v3  ;;  %v1387_v10 = vor.u32 %v1771_v6, %v1386_v5  ;;  %v1391_v11 = vor.u32 %v1770_v8, %v1388_v9  ;;  %v1378_v12 = vld [vmem:[#allocation5 + $0x1b8] sm:$0xf]  ;;  %v1769_v13 = vld [vmem:[#allocation5 + $0x1e0] sm:$0xf0]  ;;  %v1768_v14 = vld [vmem:[#allocation5 + $0x1bc] sm:$0xf] }
  0x13   :  { %186 = vmatpush.bf16.msra.mxu1 %v1399_v7  ;;  %220 = vmatpush.bf16.msra.mxu3 %v1399_v7  ;;  %v1380_v15 = vld [vmem:[#allocation5 + $0x1e4] sm:$0xf0]  ;;  %v1379_v16 = vor.u32 %v1769_v13, %v1378_v12  ;;  %v1370_v18 = vld [vmem:[#allocation5 + $0x160] sm:$0xf]  ;;  %v1767_v19 = vld [vmem:[#allocation5 + $0x188] sm:$0xf0] }
  0x14   :  { %v1383_v17 = vor.u32 %v1768_v14, %v1380_v15  ;;  %v1766_v20 = vld [vmem:[#allocation5 + $0x164] sm:$0xf]  ;;  %v1372_v21 = vld [vmem:[#allocation5 + $0x18c] sm:$0xf0]  ;;  %v1371_v22 = vor.u32 %v1767_v19, %v1370_v18  ;;  %v1362_v24 = vld [vmem:[#allocation5 + $0x108] sm:$0xf] }
  0x15   :  { %v1375_v23 = vor.u32 %v1766_v20, %v1372_v21  ;;  %v1765_v25 = vld [vmem:[#allocation5 + $0x130] sm:$0xf0]  ;;  %v1764_v26 = vld [vmem:[#allocation5 + $0x10c] sm:$0xf]  ;;  %v1364_v27 = vld [vmem:[#allocation5 + $0x134] sm:$0xf0] }
  0x16   :  { %173 = vmatpush.bf16.msra.mxu0 %v1387_v10  ;;  %207 = vmatpush.bf16.msra.mxu2 %v1387_v10  ;;  %v1363_v28 = vor.u32 %v1765_v25, %v1362_v24  ;;  %v1367_v29 = vor.u32 %v1764_v26, %v1364_v27  ;;  %v1354_v30 = vld [vmem:[#allocation5 + $0xb0] sm:$0xf]  ;;  %v1763_v31 = vld [vmem:[#allocation5 + $0xd8] sm:$0xf0]  ;;  %v1762_v32 = vld [vmem:[#allocation5 + $0xb4] sm:$0xf] }
  0x17   :  { %187 = vmatpush.bf16.msra.mxu1 %v1391_v11  ;;  %221 = vmatpush.bf16.msra.mxu3 %v1391_v11  ;;  %v1356_v33 = vld [vmem:[#allocation5 + $0xdc] sm:$0xf0]  ;;  %v1355_v34 = vor.u32 %v1763_v31, %v1354_v30  ;;  %v1346_v36 = vld [vmem:[#allocation5 + $0x58] sm:$0xf]  ;;  %v1761_v37 = vld [vmem:[#allocation5 + $0x80] sm:$0xf0] }
  0x18   :  { %v1359_v35 = vor.u32 %v1762_v32, %v1356_v33  ;;  %v1760_v38 = vld [vmem:[#allocation5 + $0x5c] sm:$0xf]  ;;  %v1348_v39 = vld [vmem:[#allocation5 + $0x84] sm:$0xf0]  ;;  %v1347_v40 = vor.u32 %v1761_v37, %v1346_v36  ;;  %v1338_v42 = vld [vmem:[#allocation5] sm:$0xf] }
  0x19   :  { %v1351_v41 = vor.u32 %v1760_v38, %v1348_v39  ;;  %v1759_v43 = vld [vmem:[#allocation5 + $0x28] sm:$0xf0]  ;;  %v1758_v44 = vld [vmem:[#allocation5 + $0x4] sm:$0xf]  ;;  %v1340_v45 = vld [vmem:[#allocation5 + $0x2c] sm:$0xf0] }
  0x1a   :  { %174 = vmatpush.bf16.msra.mxu0 %v1379_v16  ;;  %208 = vmatpush.bf16.msra.mxu2 %v1379_v16  ;;  %v1434_v46 = vld [vmem:[#allocation5 + $0x270] sm:$0xf]  ;;  %v1781_v47 = vld [vmem:[#allocation5 + $0x298] sm:$0xf0]  ;;  %v1339_v50 = vor.u32 %v1759_v43, %v1338_v42  ;;  %v1343_v51 = vor.u32 %v1758_v44, %v1340_v45  ;;  %v1430_v56 = vld [vmem:[#allocation5 + $0x218] sm:$0xf] }
  0x1b   :  { %188 = vmatpush.bf16.msra.mxu1 %v1383_v17  ;;  %222 = vmatpush.bf16.msra.mxu3 %v1383_v17  ;;  %v1466_v48 = vld [vmem:[#allocation5 + $0x530] sm:$0xf]  ;;  %v1789_v49 = vld [vmem:[#allocation5 + $0x558] sm:$0xf0]  ;;  %v1435_v54 = vor.u32 %v1781_v47, %v1434_v46  ;;  %v1780_v57 = vld [vmem:[#allocation5 + $0x240] sm:$0xf0] }
  0x1c   :  { %v1756_v52 = vld [vmem:[#allocation2] sm:$0xff]  ;;  %v1757_v53 = vld [vmem:[#allocation2 + $0x8] sm:$0xff]  ;;  %v1467_v55 = vor.u32 %v1789_v49, %v1466_v48  ;;  %v1788_v59 = vld [vmem:[#allocation5 + $0x500] sm:$0xf0]  ;;  %v1431_v60 = vor.u32 %v1780_v57, %v1430_v56  ;;  %s1988_s0 = smov [#allocation8]   ;;  %s1318_s5 = sshll.u32 %s2026_s3, 4  ;;  %s1319_s5 = int_to_ptr.hbm [resolvable:$true] %s1318_s5 }
  0x1d   :  { %v1462_v58 = vld [vmem:[#allocation5 + $0x4d8] sm:$0xf]  ;;  %v1426_v62 = vld [vmem:[#allocation5 + $0x1c0] sm:$0xf]  ;;  %v1779_v63 = vld [vmem:[#allocation5 + $0x1e8] sm:$0xf0] }
  0x1e   :  { %175 = vmatpush.bf16.msra.mxu0 %v1371_v22  ;;  %209 = vmatpush.bf16.msra.mxu2 %v1371_v22  ;;  %v1463_v61 = vor.u32 %v1788_v59, %v1462_v58  ;;  %v1458_v0 = vld [vmem:[#allocation5 + $0x480] sm:$0xf]  ;;  %v1787_v1 = vld [vmem:[#allocation5 + $0x4a8] sm:$0xf0]  ;;  %v1427_v2 = vor.u32 %v1779_v63, %v1426_v62  ;;  %v1422_v4 = vld [vmem:[#allocation5 + $0x168] sm:$0xf] }
  0x1f   :  { %189 = vmatpush.bf16.msra.mxu1 %v1375_v23  ;;  %223 = vmatpush.bf16.msra.mxu3 %v1375_v23  ;;  %v1459_v3 = vor.u32 %v1787_v1, %v1458_v0  ;;  %v1778_v5 = vld [vmem:[#allocation5 + $0x190] sm:$0xf0]  ;;  %v1454_v6 = vld [vmem:[#allocation5 + $0x428] sm:$0xf]  ;;  %v1418_v10 = vld [vmem:[#allocation5 + $0x110] sm:$0xf] }
  0x20   :  { %v1786_v7 = vld [vmem:[#allocation5 + $0x450] sm:$0xf0]  ;;  %v1423_v8 = vor.u32 %v1778_v5, %v1422_v4  ;;  %v1777_v11 = vld [vmem:[#allocation5 + $0x138] sm:$0xf0]  ;;  %v1450_v12 = vld [vmem:[#allocation5 + $0x3d0] sm:$0xf] }
  0x21   :  { %v1455_v9 = vor.u32 %v1786_v7, %v1454_v6  ;;  %v1419_v13 = vor.u32 %v1777_v11, %v1418_v10  ;;  %v1785_v14 = vld [vmem:[#allocation5 + $0x3f8] sm:$0xf0]  ;;  %v1414_v16 = vld [vmem:[#allocation5 + $0xb8] sm:$0xf]  ;;  %v1776_v17 = vld [vmem:[#allocation5 + $0xe0] sm:$0xf0] }
  0x22   :  { %176 = vmatpush.bf16.msra.mxu0 %v1363_v28  ;;  %210 = vmatpush.bf16.msra.mxu2 %v1363_v28  ;;  %v1451_v15 = vor.u32 %v1785_v14, %v1450_v12  ;;  %v1415_v18 = vor.u32 %v1776_v17, %v1414_v16  ;;  %v1446_v19 = vld [vmem:[#allocation5 + $0x378] sm:$0xf]  ;;  %v1784_v20 = vld [vmem:[#allocation5 + $0x3a0] sm:$0xf0]  ;;  %v1410_v22 = vld [vmem:[#allocation5 + $0x60] sm:$0xf] }
  0x23   :  { %190 = vmatpush.bf16.msra.mxu1 %v1367_v29  ;;  %224 = vmatpush.bf16.msra.mxu3 %v1367_v29  ;;  %v1447_v21 = vor.u32 %v1784_v20, %v1446_v19  ;;  %v1775_v23 = vld [vmem:[#allocation5 + $0x88] sm:$0xf0]  ;;  %v1442_v24 = vld [vmem:[#allocation5 + $0x320] sm:$0xf]  ;;  %v1406_v28 = vld [vmem:[#allocation5 + $0x8] sm:$0xf] }
  0x24   :  { %v1411_v25 = vor.u32 %v1775_v23, %v1410_v22  ;;  %v1783_v26 = vld [vmem:[#allocation5 + $0x348] sm:$0xf0]  ;;  %v1774_v29 = vld [vmem:[#allocation5 + $0x30] sm:$0xf0]  ;;  %v1438_v30 = vld [vmem:[#allocation5 + $0x2c8] sm:$0xf] }
  0x25   :  { %v1443_v27 = vor.u32 %v1783_v26, %v1442_v24  ;;  %v1407_v31 = vor.u32 %v1774_v29, %v1406_v28  ;;  %v1782_v32 = vld [vmem:[#allocation5 + $0x2f0] sm:$0xf0]  ;;  %v1494_v36 = vld [vmem:[#allocation5 + $0x21c] sm:$0xf]  ;;  %v1796_v38 = vld [vmem:[#allocation5 + $0x244] sm:$0xf0] }
  0x26   :  { %177 = vmatpush.bf16.msra.mxu0 %v1355_v34  ;;  %211 = vmatpush.bf16.msra.mxu2 %v1355_v34  ;;  %v1439_v33 = vor.u32 %v1782_v32, %v1438_v30  ;;  %v1498_v34 = vld [vmem:[#allocation5 + $0x274] sm:$0xf]  ;;  %v1495_v39 = vor.u32 %v1796_v38, %v1494_v36  ;;  %v1486_v43 = vld [vmem:[#allocation5 + $0x16c] sm:$0xf]  ;;  %v1794_v44 = vld [vmem:[#allocation5 + $0x194] sm:$0xf0] }
  0x27   :  { %191 = vmatpush.bf16.msra.mxu1 %v1359_v35  ;;  %225 = vmatpush.bf16.msra.mxu3 %v1359_v35  ;;  %v1797_v35 = vld [vmem:[#allocation5 + $0x29c] sm:$0xf0]  ;;  %v1487_v48 = vor.u32 %v1794_v44, %v1486_v43  ;;  %v1478_v16 = vld [vmem:[#allocation5 + $0xbc] sm:$0xf]  ;;  %v1792_v17 = vld [vmem:[#allocation5 + $0xe4] sm:$0xf0] }
  0x28   :  { %v1499_v37 = vor.u32 %v1797_v35, %v1498_v34  ;;  %v80_v45 = vld [vmem:[#allocation7] sm:$0x3]  ;;  %v1474_v19 = vld [vmem:[#allocation5 + $0x64] sm:$0xf]  ;;  %v1791_v20 = vld [vmem:[#allocation5 + $0x8c] sm:$0xf0] }
  0x29   :  { %v82_v49 = vperm.slane %v80_v45, 0  ;;  %v1793_v14 = vld [vmem:[#allocation5 + $0x13c] sm:$0xf0]  ;;  %v1470_v22 = vld [vmem:[#allocation5 + $0xc] sm:$0xf]  ;;  %s1316_s2 = sshll.u32 %s1988_s0, 4  ;;  %s1317_s2 = int_to_ptr.vmem [resolvable:$true] %s1316_s2 }
  0x2a   :  { %178 = vmatpush.bf16.msra.mxu0 %v1347_v40  ;;  %212 = vmatpush.bf16.msra.mxu2 %v1347_v40  ;;  %v1490_v40 = vld [vmem:[#allocation5 + $0x1c4] sm:$0xf]  ;;  %v1790_v23 = vld [vmem:[#allocation5 + $0x34] sm:$0xf0]  ;;  %v1804_v29 = vld [vmem:[#allocation5 + $0x248] sm:$0xf0] }
  0x2b   :  { %192 = vmatpush.bf16.msra.mxu1 %v1351_v41  ;;  %226 = vmatpush.bf16.msra.mxu3 %v1351_v41  ;;  %v1795_v41 = vld [vmem:[#allocation5 + $0x1ec] sm:$0xf0]  ;;  %v1471_v24 = vor.u32 %v1790_v23, %v1470_v22  ;;  %v1805_v26 = vld [vmem:[#allocation5 + $0x2a0] sm:$0xf0]  ;;  %v1872_v32 = vld [vmem:[#allocation7 + $0x2] ss:$0 sm:$0xff] }
  0x2c   :  { %v1491_v42 = vor.u32 %v1795_v41, %v1490_v40  ;;  %v1522_v34 = vld [vmem:[#allocation5 + $0x1c8] sm:$0xf]  ;;  %v1803_v35 = vld [vmem:[#allocation5 + $0x1f0] sm:$0xf0]  ;;  %v1518_v38 = vld [vmem:[#allocation5 + $0x170] sm:$0xf] }
  0x2d   :  { %v1523_v36 = vor.u32 %v1803_v35, %v1522_v34  ;;  %v1546_v35 = vld [vmem:[#allocation5 + $0x11c] sm:$0xf]  ;;  %s1989_s6 = smov 128   ;;  %s1990_s7 = smov 8  }
  0x2e   :  { %179 = vmatpush.bf16.msra.mxu0 %v1339_v50  ;;  %213 = vmatpush.bf16.msra.mxu2 %v1339_v50  ;;  %v83_v50 = vperm.slane %v80_v45, 1 }
  0x2f   :  { %193 = vmatpush.bf16.msra.mxu1 %v1343_v51  ;;  %227 = vmatpush.bf16.msra.mxu3 %v1343_v51 }
  0x31   :  { %180 = vmatmul.bf16.vlgmr.msra.gmra.mxu0 %v1756_v52  ;;  %214 = vmatmul.bf16.vlgmr.msra.gmra.mxu2 %v1757_v53 }
  0x32   :  { %378 = vmatpush.bf16.msrb.mxu0 %v1435_v54  ;;  %194 = vmatmul.bf16.vlgmr.msra.gmra.mxu1 %v1756_v52 }
  0x33   :  { %392 = vmatpush.bf16.msrb.mxu1 %v1467_v55  ;;  %228 = vmatmul.bf16.vlgmr.msra.gmra.mxu3 %v1757_v53 }
  0x34   :  { %406 = vmatpush.bf16.msrb.mxu2 %v1435_v54  ;;  %420 = vmatpush.bf16.msrb.mxu3 %v1467_v55 }
  0x36   :  { %379 = vmatpush.bf16.msrb.mxu0 %v1431_v60 }
  0x37   :  { %393 = vmatpush.bf16.msrb.mxu1 %v1463_v61 }
  0x38   :  { %407 = vmatpush.bf16.msrb.mxu2 %v1431_v60  ;;  %421 = vmatpush.bf16.msrb.mxu3 %v1463_v61 }
  0x3a   :  { %380 = vmatpush.bf16.msrb.mxu0 %v1427_v2 }
  0x3b   :  { %394 = vmatpush.bf16.msrb.mxu1 %v1459_v3 }
  0x3c   :  { %408 = vmatpush.bf16.msrb.mxu2 %v1427_v2  ;;  %422 = vmatpush.bf16.msrb.mxu3 %v1459_v3 }
  0x3e   :  { %381 = vmatpush.bf16.msrb.mxu0 %v1423_v8 }
  0x3f   :  { %395 = vmatpush.bf16.msrb.mxu1 %v1455_v9 }
  0x40   :  { %409 = vmatpush.bf16.msrb.mxu2 %v1423_v8  ;;  %423 = vmatpush.bf16.msrb.mxu3 %v1455_v9 }
  0x42   :  { %382 = vmatpush.bf16.msrb.mxu0 %v1419_v13 }
  0x43   :  { %396 = vmatpush.bf16.msrb.mxu1 %v1451_v15 }
  0x44   :  { %410 = vmatpush.bf16.msrb.mxu2 %v1419_v13  ;;  %424 = vmatpush.bf16.msrb.mxu3 %v1451_v15  ;;  %v1482_v13 = vld [vmem:[#allocation5 + $0x114] sm:$0xf] }
  0x45   :  { %v1483_v15 = vor.u32 %v1793_v14, %v1482_v13  ;;  %v1554_v14 = vld [vmem:[#allocation5 + $0x1cc] sm:$0xf] }
  0x46   :  { %383 = vmatpush.bf16.msrb.mxu0 %v1415_v18 }
  0x47   :  { %397 = vmatpush.bf16.msrb.mxu1 %v1447_v21 }
  0x48   :  { %411 = vmatpush.bf16.msrb.mxu2 %v1415_v18  ;;  %425 = vmatpush.bf16.msrb.mxu3 %v1447_v21  ;;  %v1479_v18 = vor.u32 %v1792_v17, %v1478_v16  ;;  %v1475_v21 = vor.u32 %v1791_v20, %v1474_v19  ;;  %v1550_v19 = vld [vmem:[#allocation5 + $0x174] sm:$0xf]  ;;  %v1810_v20 = vld [vmem:[#allocation5 + $0x19c] sm:$0xf0] }
  0x4a   :  { %384 = vmatpush.bf16.msrb.mxu0 %v1411_v25 }
  0x4b   :  { %398 = vmatpush.bf16.msrb.mxu1 %v1443_v27 }
  0x4c   :  { %412 = vmatpush.bf16.msrb.mxu2 %v1411_v25  ;;  %426 = vmatpush.bf16.msrb.mxu3 %v1443_v27  ;;  %v1530_v25 = vld [vmem:[#allocation5 + $0x278] sm:$0xf]  ;;  %v1526_v27 = vld [vmem:[#allocation5 + $0x220] sm:$0xf] }
  0x4d   :  { %v1531_v28 = vor.u32 %v1805_v26, %v1530_v25 }
  0x4e   :  { %385 = vmatpush.bf16.msrb.mxu0 %v1407_v31 }
  0x4f   :  { %399 = vmatpush.bf16.msrb.mxu1 %v1439_v33 }
  0x50   :  { %413 = vmatpush.bf16.msrb.mxu2 %v1407_v31  ;;  %427 = vmatpush.bf16.msrb.mxu3 %v1439_v33  ;;  %v1527_v31 = vor.u32 %v1804_v29, %v1526_v27 }
  0x52   :  { %508 = vmatpush.bf16.msra.mxu0 %v1499_v37 }
  0x53   :  { %522 = vmatpush.bf16.msra.mxu1 %v1499_v37 }
  0x54   :  { %610 = vmatpush.bf16.msra.mxu2 %v1531_v28  ;;  %624 = vmatpush.bf16.msra.mxu3 %v1531_v28 }
  0x56   :  { %509 = vmatpush.bf16.msra.mxu0 %v1495_v39 }
  0x57   :  { %523 = vmatpush.bf16.msra.mxu1 %v1495_v39  ;;  %v1802_v39 = vld [vmem:[#allocation5 + $0x198] sm:$0xf0] }
  0x58   :  { %611 = vmatpush.bf16.msra.mxu2 %v1527_v31  ;;  %625 = vmatpush.bf16.msra.mxu3 %v1527_v31  ;;  %v1519_v41 = vor.u32 %v1802_v39, %v1518_v38  ;;  %v1542_v38 = vld [vmem:[#allocation5 + $0xc4] sm:$0xf]  ;;  %v1808_v39 = vld [vmem:[#allocation5 + $0xec] sm:$0xf0] }
  0x5a   :  { %510 = vmatpush.bf16.msra.mxu0 %v1491_v42 }
  0x5b   :  { %524 = vmatpush.bf16.msra.mxu1 %v1491_v42 }
  0x5c   :  { %612 = vmatpush.bf16.msra.mxu2 %v1523_v36  ;;  %626 = vmatpush.bf16.msra.mxu3 %v1523_v36  ;;  %v1809_v36 = vld [vmem:[#allocation5 + $0x144] sm:$0xf0] }
  0x5e   :  { %511 = vmatpush.bf16.msra.mxu0 %v1487_v48 }
  0x5f   :  { %525 = vmatpush.bf16.msra.mxu1 %v1487_v48 }
  0x60   :  { %613 = vmatpush.bf16.msra.mxu2 %v1519_v41  ;;  %627 = vmatpush.bf16.msra.mxu3 %v1519_v41  ;;  %v1538_v41 = vld [vmem:[#allocation5 + $0x6c] sm:$0xf] }
  0x62   :  { %512 = vmatpush.bf16.msra.mxu0 %v1483_v15 }
  0x63   :  { %526 = vmatpush.bf16.msra.mxu1 %v1483_v15  ;;  %v1811_v15 = vld [vmem:[#allocation5 + $0x1f4] sm:$0xf0] }
  0x64   :  { %v1555_v17 = vor.u32 %v1811_v15, %v1554_v14  ;;  %v1816_v14 = vld [vmem:[#allocation5 + $0xf0] sm:$0xf0] }
  0x66   :  { %513 = vmatpush.bf16.msra.mxu0 %v1479_v18 }
  0x67   :  { %527 = vmatpush.bf16.msra.mxu1 %v1479_v18  ;;  %v1873_v18 = vld [vmem:[#allocation7 + $0x3] ss:$0 sm:$0xff] }
  0x6a   :  { %514 = vmatpush.bf16.msra.mxu0 %v1475_v21 }
  0x6b   :  { %528 = vmatpush.bf16.msra.mxu1 %v1475_v21  ;;  %v1551_v21 = vor.u32 %v1810_v20, %v1550_v19  ;;  %v1566_v19 = vld [vmem:[#allocation5 + $0x18] sm:$0xf]  ;;  %v1814_v20 = vld [vmem:[#allocation5 + $0x40] sm:$0xf0] }
  0x6e   :  { %515 = vmatpush.bf16.msra.mxu0 %v1471_v24 }
  0x6f   :  { %529 = vmatpush.bf16.msra.mxu1 %v1471_v24 }
  0xae   :  { %v181_v46 = vpop.f32.mrf.mxu0 }
  0xaf   :  { %v195_v47 = vpop.f32.mrf.mxu1  ;;  %v182_v52 = vadd.f32 %v181_v46, %v82_v49 }
  0xb0   :  { %v196_v54 = vadd.f32 %v195_v47, %v83_v50 }
  0xb1   :  { %v234_v59 = vmax.f32 %v182_v52, 0.0 }
  0xb2   :  { %v235_v61 = vmax.f32 %v196_v54, 0.0 }
  0xb4   :  { %v215_v51 = vpop.f32.mrf.mxu2 }
  0xb5   :  { %v216_v63 = vadd.f32 %v215_v51, %v82_v49 }
  0xb6   :  { %v229_v53 = vpop.f32.mrf.mxu3  ;;  %v183_v55 = vpop.f32.mrf.mxu0 }
  0xb7   :  { %v184_v56 = vadd.f32 %v183_v55, %v82_v49  ;;  %v197_v57 = vpop.f32.mrf.mxu1  ;;  %v230_v1 = vadd.f32 %v229_v53, %v83_v50  ;;  %v238_v7 = vmax.f32 %v216_v63, 0.0  ;;  %v1510_v63 = vld [vmem:[#allocation5 + $0xc0] sm:$0xf] }
  0xb8   :  { %v198_v58 = vadd.f32 %v197_v57, %v83_v50 }
  0xb9   :  { %v236_v60 = vmax.f32 %v184_v56, 0.0  ;;  %v239_v9 = vmax.f32 %v230_v1, 0.0 }
  0xba   :  { %v237_v62 = vmax.f32 %v198_v58, 0.0 }
  0xbb   :  { %v242_v0 = vpack.c.bf16 %v236_v60, %v234_v59  ;;  %v1514_v60 = vld [vmem:[#allocation5 + $0x118] sm:$0xf] }
  0xbc   :  { %v243_v2 = vpack.c.bf16 %v237_v62, %v235_v61  ;;  %v217_v3 = vpop.f32.mrf.mxu2  ;;  %v1801_v61 = vld [vmem:[#allocation5 + $0x140] sm:$0xf0] }
  0xbd   :  { %v218_v4 = vadd.f32 %v217_v3, %v82_v49  ;;  %386 = vmatmul.bf16.vlgmr.msrb.gmra.mxu0 %v242_v0  ;;  %v1515_v62 = vor.u32 %v1801_v61, %v1514_v60  ;;  %v1800_v0 = vld [vmem:[#allocation5 + $0xe8] sm:$0xf0]  ;;  %v1799_v3 = vld [vmem:[#allocation5 + $0x90] sm:$0xf0] }
  0xbe   :  { %v231_v5 = vpop.f32.mrf.mxu3  ;;  %400 = vmatmul.bf16.vlgmr.msrb.gmra.mxu1 %v243_v2  ;;  %v1511_v1 = vor.u32 %v1800_v0, %v1510_v63  ;;  %v1506_v2 = vld [vmem:[#allocation5 + $0x68] sm:$0xf] }
  0xbf   :  { %v232_v6 = vadd.f32 %v231_v5, %v83_v50  ;;  %v240_v8 = vmax.f32 %v218_v4, 0.0  ;;  %614 = vmatpush.bf16.msra.mxu2 %v1515_v62  ;;  %628 = vmatpush.bf16.msra.mxu3 %v1515_v62  ;;  %v1507_v4 = vor.u32 %v1799_v3, %v1506_v2  ;;  %v1502_v5 = vld [vmem:[#allocation5 + $0x10] sm:$0xf] }
  0xc1   :  { %v241_v10 = vmax.f32 %v232_v6, 0.0  ;;  %v244_v11 = vpack.c.bf16 %v240_v8, %v238_v7  ;;  %v1798_v6 = vld [vmem:[#allocation5 + $0x38] sm:$0xf0] }
  0xc2   :  { %v1503_v7 = vor.u32 %v1798_v6, %v1502_v5  ;;  %v1562_v8 = vld [vmem:[#allocation5 + $0x27c] sm:$0xf] }
  0xc3   :  { %v245_v12 = vpack.c.bf16 %v241_v10, %v239_v9  ;;  %414 = vmatmul.bf16.vlgmr.msrb.gmra.mxu2 %v244_v11  ;;  %629 = vmatpush.bf16.msra.mxu3 %v1511_v1  ;;  %v1813_v9 = vld [vmem:[#allocation5 + $0x2a4] sm:$0xf0]  ;;  %v1558_v10 = vld [vmem:[#allocation5 + $0x224] sm:$0xf] }
  0xc4   :  { %615 = vmatpush.bf16.msra.mxu2 %v1511_v1  ;;  %v1563_v11 = vor.u32 %v1813_v9, %v1562_v8 }
  0xc5   :  { %428 = vmatmul.bf16.vlgmr.msrb.gmra.mxu3 %v245_v12  ;;  %v1812_v12 = vld [vmem:[#allocation5 + $0x24c] sm:$0xf0] }
  0xc6   :  { %712 = vmatpush.bf16.msrb.mxu0 %v1563_v11  ;;  %v1559_v13 = vor.u32 %v1812_v12, %v1558_v10  ;;  %726 = vmatpush.bf16.msrb.mxu1 %v1563_v11  ;;  %v1578_v10 = vld [vmem:[#allocation5 + $0x120] sm:$0xf]  ;;  %v1817_v11 = vld [vmem:[#allocation5 + $0x148] sm:$0xf0] }
  0xc7   :  { %630 = vmatpush.bf16.msra.mxu3 %v1507_v4  ;;  %v1579_v12 = vor.u32 %v1817_v11, %v1578_v10  ;;  %v1841_v10 = vld [vmem:[#allocation5 + $0x200] sm:$0xf0] }
  0xc8   :  { %616 = vmatpush.bf16.msra.mxu2 %v1507_v4 }
  0xca   :  { %713 = vmatpush.bf16.msrb.mxu0 %v1559_v13  ;;  %727 = vmatpush.bf16.msrb.mxu1 %v1559_v13  ;;  %v1574_v13 = vld [vmem:[#allocation5 + $0xc8] sm:$0xf] }
  0xcb   :  { %631 = vmatpush.bf16.msra.mxu3 %v1503_v7  ;;  %v1575_v15 = vor.u32 %v1816_v14, %v1574_v13  ;;  %v1672_v13 = vld [vmem:[#allocation5 + $0x204] sm:$0xf0] }
  0xcc   :  { %617 = vmatpush.bf16.msra.mxu2 %v1503_v7 }
  0xce   :  { %714 = vmatpush.bf16.msrb.mxu0 %v1555_v17  ;;  %728 = vmatpush.bf16.msrb.mxu1 %v1555_v17  ;;  %v1815_v17 = vld [vmem:[#allocation5 + $0x98] sm:$0xf0] }
  0xd2   :  { %715 = vmatpush.bf16.msrb.mxu0 %v1551_v21  ;;  %729 = vmatpush.bf16.msrb.mxu1 %v1551_v21  ;;  %v1567_v21 = vor.u32 %v1814_v20, %v1566_v19  ;;  %v1838_v19 = vld [vmem:[#allocation5 + $0x184] sm:$0xf]  ;;  %v1664_v20 = vld [vmem:[#allocation5 + $0x1ac] sm:$0xf0] }
 0x13a   :  { %v387_v30 = vpop.f32.mrf.mxu0 }
 0x13b   :  { %v401_v33 = vpop.f32.mrf.mxu1  ;;  %v388_v37 = vadd.f32 %v1872_v32, %v387_v30 }
 0x13d   :  { %v402_v42 = vadd.f32 %v401_v33, %v388_v37  ;;  %v1547_v37 = vor.u32 %v1809_v36, %v1546_v35 }
 0x13f   :  { %v434_v47 = vmax.f32 %v402_v42, 0.0  ;;  %716 = vmatpush.bf16.msrb.mxu0 %v1547_v37  ;;  %730 = vmatpush.bf16.msrb.mxu1 %v1547_v37  ;;  %v1807_v42 = vld [vmem:[#allocation5 + $0x94] sm:$0xf0] }
 0x142   :  { %v389_v40 = vpop.f32.mrf.mxu0 }
 0x143   :  { %v390_v43 = vadd.f32 %v1872_v32, %v389_v40  ;;  %v403_v44 = vpop.f32.mrf.mxu1  ;;  %v1543_v40 = vor.u32 %v1808_v39, %v1542_v38 }
 0x145   :  { %v404_v45 = vadd.f32 %v403_v44, %v390_v43  ;;  %717 = vmatpush.bf16.msrb.mxu0 %v1543_v40  ;;  %731 = vmatpush.bf16.msrb.mxu1 %v1543_v40  ;;  %v1539_v43 = vor.u32 %v1807_v42, %v1538_v41  ;;  %v1534_v44 = vld [vmem:[#allocation5 + $0x14] sm:$0xf] }
 0x146   :  { %v415_v46 = vpop.f32.mrf.mxu2 }
 0x147   :  { %v435_v48 = vmax.f32 %v404_v45, 0.0  ;;  %v416_v51 = vadd.f32 %v1872_v32, %v415_v46  ;;  %v1806_v45 = vld [vmem:[#allocation5 + $0x3c] sm:$0xf0] }
 0x148   :  { %v429_v49 = vpop.f32.mrf.mxu3  ;;  %v1535_v46 = vor.u32 %v1806_v45, %v1534_v44 }
 0x149   :  { %v438_v50 = vpack.c.bf16 %v435_v48, %v434_v47  ;;  %v430_v53 = vadd.f32 %v429_v49, %v416_v51  ;;  %718 = vmatpush.bf16.msrb.mxu0 %v1539_v43  ;;  %732 = vmatpush.bf16.msrb.mxu1 %v1539_v43  ;;  %v1594_v47 = vld [vmem:[#allocation5 + $0x280] sm:$0xf]  ;;  %v1821_v48 = vld [vmem:[#allocation5 + $0x2a8] sm:$0xf0]  ;;  %v1590_v49 = vld [vmem:[#allocation5 + $0x228] sm:$0xf] }
 0x14a   :  { %v1820_v51 = vld [vmem:[#allocation5 + $0x250] sm:$0xf0] }
 0x14b   :  { %516 = vmatmul.bf16.vlgmr.msra.gmra.mxu0 %v438_v50  ;;  %v436_v57 = vmax.f32 %v430_v53, 0.0  ;;  %v1595_v50 = vor.u32 %v1821_v48, %v1594_v47  ;;  %v1586_v53 = vld [vmem:[#allocation5 + $0x1d0] sm:$0xf] }
 0x14d   :  { %719 = vmatpush.bf16.msrb.mxu0 %v1535_v46  ;;  %733 = vmatpush.bf16.msrb.mxu1 %v1535_v46 }
 0x14e   :  { %v417_v52 = vpop.f32.mrf.mxu2  ;;  %814 = vmatpush.bf16.msrb.mxu2 %v1595_v50  ;;  %828 = vmatpush.bf16.msrb.mxu3 %v1595_v50  ;;  %v1825_v50 = vld [vmem:[#allocation5 + $0x14c] sm:$0xf0] }
 0x14f   :  { %v418_v54 = vadd.f32 %v1872_v32, %v417_v52  ;;  %v1591_v52 = vor.u32 %v1820_v51, %v1590_v49  ;;  %v1610_v49 = vld [vmem:[#allocation5 + $0x124] sm:$0xf] }
 0x150   :  { %v431_v55 = vpop.f32.mrf.mxu3  ;;  %v1611_v51 = vor.u32 %v1825_v50, %v1610_v49  ;;  %v1833_v49 = vld [vmem:[#allocation5 + $0xa0] sm:$0xf0]  ;;  %v1832_v50 = vld [vmem:[#allocation5 + $0x7c] sm:$0xf] }
 0x151   :  { %v432_v56 = vadd.f32 %v431_v55, %v418_v54  ;;  %v1819_v54 = vld [vmem:[#allocation5 + $0x1f8] sm:$0xf0] }
 0x152   :  { %815 = vmatpush.bf16.msrb.mxu2 %v1591_v52  ;;  %829 = vmatpush.bf16.msrb.mxu3 %v1591_v52  ;;  %v1606_v52 = vld [vmem:[#allocation5 + $0xcc] sm:$0xf] }
 0x153   :  { %v437_v58 = vmax.f32 %v432_v56, 0.0  ;;  %v1587_v56 = vor.u32 %v1819_v54, %v1586_v53  ;;  %v1824_v53 = vld [vmem:[#allocation5 + $0xf4] sm:$0xf0] }
 0x154   :  { %v1607_v54 = vor.u32 %v1824_v53, %v1606_v52  ;;  %v1640_v52 = vld [vmem:[#allocation5 + $0xa4] sm:$0xf0] }
 0x155   :  { %v439_v59 = vpack.c.bf16 %v437_v58, %v436_v57  ;;  %v1874_v57 = vld [vmem:[#allocation7 + $0x4] ss:$0 sm:$0xff]  ;;  %v1582_v58 = vld [vmem:[#allocation5 + $0x178] sm:$0xf]  ;;  %v1643_v53 = vor.u32 %v1832_v50, %v1640_v52 }
 0x156   :  { %816 = vmatpush.bf16.msrb.mxu2 %v1587_v56  ;;  %830 = vmatpush.bf16.msrb.mxu3 %v1587_v56  ;;  %v1823_v56 = vld [vmem:[#allocation5 + $0x9c] sm:$0xf0] }
 0x157   :  { %530 = vmatmul.bf16.vlgmr.msra.gmra.mxu1 %v439_v59  ;;  %v1818_v59 = vld [vmem:[#allocation5 + $0x1a0] sm:$0xf0] }
 0x158   :  { %v1583_v60 = vor.u32 %v1818_v59, %v1582_v58  ;;  %v1598_v58 = vld [vmem:[#allocation5 + $0x1c] sm:$0xf]  ;;  %v1822_v59 = vld [vmem:[#allocation5 + $0x44] sm:$0xf0] }
 0x15a   :  { %817 = vmatpush.bf16.msrb.mxu2 %v1583_v60  ;;  %831 = vmatpush.bf16.msrb.mxu3 %v1583_v60  ;;  %v1599_v60 = vor.u32 %v1822_v59, %v1598_v58  ;;  %v1632_v58 = vld [vmem:[#allocation5 + $0x4c] sm:$0xf0] }
 0x15e   :  { %818 = vmatpush.bf16.msrb.mxu2 %v1579_v12  ;;  %832 = vmatpush.bf16.msrb.mxu3 %v1579_v12  ;;  %v1840_v12 = vld [vmem:[#allocation5 + $0x1dc] sm:$0xf] }
 0x162   :  { %819 = vmatpush.bf16.msrb.mxu2 %v1575_v15  ;;  %833 = vmatpush.bf16.msrb.mxu3 %v1575_v15  ;;  %v1876_v15 = vld [vmem:[#allocation7 + $0x6] ss:$0 sm:$0xff] }
 0x1c8   :  { %v517_v16 = vpop.f32.mrf.mxu0 }
 0x1c9   :  { %v518_v22 = vadd.f32 %v1873_v18, %v517_v16  ;;  %v1570_v16 = vld [vmem:[#allocation5 + $0x70] sm:$0xf] }
 0x1cb   :  { %v536_v25 = vmax.f32 %v518_v22, 0.0  ;;  %v1626_v22 = vld [vmem:[#allocation5 + $0x284] sm:$0xf] }
 0x1d0   :  { %v519_v23 = vpop.f32.mrf.mxu0 }
 0x1d1   :  { %v520_v24 = vadd.f32 %v1873_v18, %v519_v23  ;;  %v1829_v23 = vld [vmem:[#allocation5 + $0x2ac] sm:$0xf0] }
 0x1d3   :  { %v537_v26 = vmax.f32 %v520_v24, 0.0  ;;  %v1622_v24 = vld [vmem:[#allocation5 + $0x22c] sm:$0xf] }
 0x1d4   :  { %v531_v27 = vpop.f32.mrf.mxu1 }
 0x1d5   :  { %v540_v28 = vpack.c.bf16 %v537_v26, %v536_v25  ;;  %v532_v29 = vadd.f32 %v1873_v18, %v531_v27  ;;  %v1627_v25 = vor.u32 %v1829_v23, %v1626_v22  ;;  %v1828_v26 = vld [vmem:[#allocation5 + $0x254] sm:$0xf0]  ;;  %v1667_v23 = vor.u32 %v1838_v19, %v1664_v20  ;;  %v1858_v19 = vld [vmem:[#allocation5 + $0x470] sm:$0xf0] }
 0x1d6   :  { %v1623_v27 = vor.u32 %v1828_v26, %v1622_v24 }
 0x1d7   :  { %618 = vmatmul.bf16.vlgmr.msra.gmra.mxu2 %v540_v28  ;;  %v538_v32 = vmax.f32 %v532_v29, 0.0  ;;  %916 = vmatpush.bf16.msra.mxu0 %v1627_v25  ;;  %v1618_v28 = vld [vmem:[#allocation5 + $0x1d4] sm:$0xf]  ;;  %v1827_v29 = vld [vmem:[#allocation5 + $0x1fc] sm:$0xf0] }
 0x1d8   :  { %930 = vmatpush.bf16.msra.mxu1 %v1627_v25 }
 0x1db   :  { %917 = vmatpush.bf16.msra.mxu0 %v1623_v27 }
 0x1dc   :  { %v533_v30 = vpop.f32.mrf.mxu1  ;;  %931 = vmatpush.bf16.msra.mxu1 %v1623_v27 }
 0x1dd   :  { %v534_v31 = vadd.f32 %v1873_v18, %v533_v30  ;;  %v1571_v18 = vor.u32 %v1815_v17, %v1570_v16  ;;  %v1675_v16 = vor.u32 %v1840_v12, %v1672_v13  ;;  %v1662_v17 = vld [vmem:[#allocation5 + $0x180] sm:$0xf]  ;;  %v1859_v12 = vld [vmem:[#allocation5 + $0x4c8] sm:$0xf0] }
 0x1df   :  { %v539_v33 = vmax.f32 %v534_v31, 0.0  ;;  %820 = vmatpush.bf16.msrb.mxu2 %v1571_v18  ;;  %834 = vmatpush.bf16.msrb.mxu3 %v1571_v18  ;;  %v1619_v31 = vor.u32 %v1827_v29, %v1618_v28  ;;  %v1839_v18 = vld [vmem:[#allocation5 + $0x1a8] sm:$0xf0] }
 0x1e1   :  { %v541_v34 = vpack.c.bf16 %v539_v33, %v538_v32  ;;  %v1875_v32 = vld [vmem:[#allocation7 + $0x5] ss:$0 sm:$0xff]  ;;  %v1614_v33 = vld [vmem:[#allocation5 + $0x17c] sm:$0xf]  ;;  %918 = vmatpush.bf16.msra.mxu0 %v1619_v31  ;;  %932 = vmatpush.bf16.msra.mxu1 %v1619_v31 }
 0x1e3   :  { %632 = vmatmul.bf16.vlgmr.msra.gmra.mxu3 %v541_v34  ;;  %821 = vmatpush.bf16.msrb.mxu2 %v1567_v21  ;;  %v1826_v34 = vld [vmem:[#allocation5 + $0x1a4] sm:$0xf0] }
 0x1e4   :  { %835 = vmatpush.bf16.msrb.mxu3 %v1567_v21  ;;  %v1615_v35 = vor.u32 %v1826_v34, %v1614_v33  ;;  %v1663_v21 = vor.u32 %v1839_v18, %v1662_v17  ;;  %v1850_v17 = vld [vmem:[#allocation5 + $0x1b0] sm:$0xf0]  ;;  %v1742_v18 = vld [vmem:[#allocation5 + $0x448] sm:$0xf] }
 0x1e6   :  { %919 = vmatpush.bf16.msra.mxu0 %v1615_v35  ;;  %933 = vmatpush.bf16.msra.mxu1 %v1615_v35 }
 0x1ea   :  { %920 = vmatpush.bf16.msra.mxu0 %v1611_v51  ;;  %934 = vmatpush.bf16.msra.mxu1 %v1611_v51 }
 0x1ee   :  { %921 = vmatpush.bf16.msra.mxu0 %v1607_v54  ;;  %935 = vmatpush.bf16.msra.mxu1 %v1607_v54  ;;  %v1630_v54 = vld [vmem:[#allocation5 + $0x20] sm:$0xf] }
 0x25a   :  { %v619_v55 = vpop.f32.mrf.mxu2 }
 0x25b   :  { %v620_v61 = vadd.f32 %v1874_v57, %v619_v55  ;;  %v1602_v55 = vld [vmem:[#allocation5 + $0x74] sm:$0xf] }
 0x25d   :  { %v638_v0 = vmax.f32 %v620_v61, 0.0  ;;  %v1686_v61 = vld [vmem:[#allocation5 + $0x288] sm:$0xf] }
 0x262   :  { %v621_v62 = vpop.f32.mrf.mxu2 }
 0x263   :  { %v622_v63 = vadd.f32 %v1874_v57, %v621_v62  ;;  %v1845_v62 = vld [vmem:[#allocation5 + $0x2b0] sm:$0xf0] }
 0x265   :  { %v639_v1 = vmax.f32 %v622_v63, 0.0  ;;  %v1844_v63 = vld [vmem:[#allocation5 + $0x28c] sm:$0xf] }
 0x266   :  { %v633_v2 = vpop.f32.mrf.mxu3 }
 0x267   :  { %v642_v3 = vpack.c.bf16 %v639_v1, %v638_v0  ;;  %v634_v4 = vadd.f32 %v1874_v57, %v633_v2  ;;  %v1687_v0 = vor.u32 %v1845_v62, %v1686_v61  ;;  %v1688_v1 = vld [vmem:[#allocation5 + $0x2b4] sm:$0xf0]  ;;  %v1678_v2 = vld [vmem:[#allocation5 + $0x230] sm:$0xf]  ;;  %v1853_v61 = vld [vmem:[#allocation5 + $0x2b8] sm:$0xf0] }
 0x268   :  { %v1754_v62 = vld [vmem:[#allocation5 + $0x550] sm:$0xf] }
 0x269   :  { %720 = vmatmul.bf16.vlgmr.msrb.gmra.mxu0 %v642_v3  ;;  %v640_v7 = vmax.f32 %v634_v4, 0.0  ;;  %v1843_v3 = vld [vmem:[#allocation5 + $0x258] sm:$0xf0]  ;;  %v1691_v4 = vor.u32 %v1844_v63, %v1688_v1  ;;  %1052 = vmatpush.bf16.msra.mxu2 %v1687_v0  ;;  %v1718_v1 = vld [vmem:[#allocation5 + $0x238] sm:$0xf] }
 0x26b   :  { %1066 = vmatpush.bf16.msra.mxu3 %v1691_v4 }
 0x26e   :  { %v635_v5 = vpop.f32.mrf.mxu3 }
 0x26f   :  { %v636_v6 = vadd.f32 %v1874_v57, %v635_v5  ;;  %v1603_v57 = vor.u32 %v1823_v56, %v1602_v55  ;;  %v1842_v5 = vld [vmem:[#allocation5 + $0x234] sm:$0xf]  ;;  %v1831_v55 = vld [vmem:[#allocation5 + $0x48] sm:$0xf0]  ;;  %v1830_v56 = vld [vmem:[#allocation5 + $0x24] sm:$0xf] }
 0x270   :  { %v1635_v59 = vor.u32 %v1830_v56, %v1632_v58 }
 0x271   :  { %v641_v8 = vmax.f32 %v636_v6, 0.0  ;;  %922 = vmatpush.bf16.msra.mxu0 %v1603_v57  ;;  %936 = vmatpush.bf16.msra.mxu1 %v1603_v57  ;;  %v1680_v6 = vld [vmem:[#allocation5 + $0x25c] sm:$0xf0]  ;;  %v1631_v57 = vor.u32 %v1831_v55, %v1630_v54  ;;  %v1846_v54 = vld [vmem:[#allocation5 + $0x50] sm:$0xf0] }
 0x272   :  { %v1726_v55 = vld [vmem:[#allocation5 + $0x2e8] sm:$0xf] }
 0x273   :  { %v643_v9 = vpack.c.bf16 %v641_v8, %v640_v7  ;;  %v1679_v7 = vor.u32 %v1843_v3, %v1678_v2  ;;  %v1683_v8 = vor.u32 %v1842_v5, %v1680_v6  ;;  %v1852_v2 = vld [vmem:[#allocation5 + $0x260] sm:$0xf0] }
 0x274   :  { %v1860_v5 = vld [vmem:[#allocation5 + $0x520] sm:$0xf0]  ;;  %v1719_v6 = vor.u32 %v1852_v2, %v1718_v1 }
 0x275   :  { %734 = vmatmul.bf16.vlgmr.msrb.gmra.mxu1 %v643_v9  ;;  %923 = vmatpush.bf16.msra.mxu0 %v1599_v60  ;;  %v1670_v9 = vld [vmem:[#allocation5 + $0x1d8] sm:$0xf] }
 0x276   :  { %937 = vmatpush.bf16.msra.mxu1 %v1599_v60  ;;  %1053 = vmatpush.bf16.msra.mxu2 %v1679_v7  ;;  %v1671_v14 = vor.u32 %v1841_v10, %v1670_v9  ;;  %v1722_v60 = vld [vmem:[#allocation5 + $0x290] sm:$0xf]  ;;  %v1851_v9 = vld [vmem:[#allocation5 + $0x208] sm:$0xf0] }
 0x277   :  { %1067 = vmatpush.bf16.msra.mxu3 %v1683_v8  ;;  %v1723_v63 = vor.u32 %v1853_v61, %v1722_v60 }
 0x279   :  { %1080 = vmatpush.bf16.msrb.mxu0 %v1687_v0  ;;  %v1861_v0 = vld [vmem:[#allocation5 + $0x578] sm:$0xf0] }
 0x27a   :  { %1094 = vmatpush.bf16.msrb.mxu1 %v1691_v4  ;;  %1054 = vmatpush.bf16.msra.mxu2 %v1671_v14  ;;  %v1755_v3 = vor.u32 %v1861_v0, %v1754_v62  ;;  %v1750_v4 = vld [vmem:[#allocation5 + $0x4f8] sm:$0xf] }
 0x27b   :  { %1068 = vmatpush.bf16.msra.mxu3 %v1675_v16 }
 0x27d   :  { %1081 = vmatpush.bf16.msrb.mxu0 %v1679_v7  ;;  %v1751_v7 = vor.u32 %v1860_v5, %v1750_v4 }
 0x27e   :  { %1095 = vmatpush.bf16.msrb.mxu1 %v1683_v8  ;;  %1055 = vmatpush.bf16.msra.mxu2 %v1663_v21  ;;  %v1714_v8 = vld [vmem:[#allocation5 + $0x1e0] sm:$0xf] }
 0x27f   :  { %1069 = vmatpush.bf16.msra.mxu3 %v1667_v23  ;;  %v1715_v13 = vor.u32 %v1851_v9, %v1714_v8 }
 0x281   :  { %1082 = vmatpush.bf16.msrb.mxu0 %v1671_v14  ;;  %v1877_v14 = vld [vmem:[#allocation7 + $0x7] ss:$0 sm:$0xff] }
 0x282   :  { %1096 = vmatpush.bf16.msrb.mxu1 %v1675_v16  ;;  %v1710_v16 = vld [vmem:[#allocation5 + $0x188] sm:$0xf] }
 0x283   :  { %v1711_v20 = vor.u32 %v1850_v17, %v1710_v16 }
 0x285   :  { %1083 = vmatpush.bf16.msrb.mxu0 %v1663_v21 }
 0x286   :  { %1097 = vmatpush.bf16.msrb.mxu1 %v1667_v23 }
 0x2e6   :  { %v721_v30 = vpop.f32.mrf.mxu0 }
 0x2e7   :  { %v722_v36 = vadd.f32 %v1875_v32, %v721_v30 }
 0x2e9   :  { %v740_v39 = vmax.f32 %v722_v36, 0.0  ;;  %v1654_v36 = vld [vmem:[#allocation5 + $0x128] sm:$0xf] }
 0x2ee   :  { %v723_v37 = vpop.f32.mrf.mxu0 }
 0x2ef   :  { %v724_v38 = vadd.f32 %v1875_v32, %v723_v37  ;;  %v1837_v37 = vld [vmem:[#allocation5 + $0x150] sm:$0xf0] }
 0x2f1   :  { %v741_v40 = vmax.f32 %v724_v38, 0.0  ;;  %v1836_v38 = vld [vmem:[#allocation5 + $0x12c] sm:$0xf] }
 0x2f2   :  { %v735_v41 = vpop.f32.mrf.mxu1 }
 0x2f3   :  { %v744_v42 = vpack.c.bf16 %v741_v40, %v740_v39  ;;  %v736_v43 = vadd.f32 %v1875_v32, %v735_v41  ;;  %v1655_v39 = vor.u32 %v1837_v37, %v1654_v36  ;;  %v1656_v40 = vld [vmem:[#allocation5 + $0x154] sm:$0xf0]  ;;  %v1849_v36 = vld [vmem:[#allocation5 + $0x158] sm:$0xf0]  ;;  %v1738_v37 = vld [vmem:[#allocation5 + $0x3f0] sm:$0xf] }
 0x2f4   :  { %v1659_v41 = vor.u32 %v1836_v38, %v1656_v40 }
 0x2f5   :  { %822 = vmatmul.bf16.vlgmr.msrb.gmra.mxu2 %v744_v42  ;;  %v742_v46 = vmax.f32 %v736_v43, 0.0  ;;  %1084 = vmatpush.bf16.msrb.mxu0 %v1655_v39  ;;  %v1646_v42 = vld [vmem:[#allocation5 + $0xd0] sm:$0xf]  ;;  %v1835_v43 = vld [vmem:[#allocation5 + $0xf8] sm:$0xf0] }
 0x2f6   :  { %1056 = vmatpush.bf16.msra.mxu2 %v1655_v39  ;;  %1070 = vmatpush.bf16.msra.mxu3 %v1659_v41  ;;  %v1857_v39 = vld [vmem:[#allocation5 + $0x418] sm:$0xf0] }
 0x2f7   :  { %1098 = vmatpush.bf16.msrb.mxu1 %v1659_v41  ;;  %v1739_v40 = vor.u32 %v1857_v39, %v1738_v37  ;;  %v1702_v41 = vld [vmem:[#allocation5 + $0xd8] sm:$0xf] }
 0x2fa   :  { %v737_v44 = vpop.f32.mrf.mxu1 }
 0x2fb   :  { %v738_v45 = vadd.f32 %v1875_v32, %v737_v44  ;;  %v1834_v44 = vld [vmem:[#allocation5 + $0xd4] sm:$0xf] }
 0x2fd   :  { %v743_v47 = vmax.f32 %v738_v45, 0.0  ;;  %v1647_v45 = vor.u32 %v1835_v43, %v1646_v42  ;;  %v1848_v42 = vld [vmem:[#allocation5 + $0x100] sm:$0xf0]  ;;  %v1734_v43 = vld [vmem:[#allocation5 + $0x398] sm:$0xf] }
 0x2ff   :  { %v745_v48 = vpack.c.bf16 %v743_v47, %v742_v46  ;;  %v1648_v46 = vld [vmem:[#allocation5 + $0xfc] sm:$0xf0]  ;;  %1057 = vmatpush.bf16.msra.mxu2 %v1647_v45  ;;  %1085 = vmatpush.bf16.msrb.mxu0 %v1647_v45  ;;  %v1856_v45 = vld [vmem:[#allocation5 + $0x3c0] sm:$0xf0] }
 0x300   :  { %v1651_v47 = vor.u32 %v1834_v44, %v1648_v46  ;;  %v1703_v44 = vor.u32 %v1848_v42, %v1702_v41  ;;  %v1735_v46 = vor.u32 %v1856_v45, %v1734_v43 }
 0x301   :  { %836 = vmatmul.bf16.vlgmr.msrb.gmra.mxu3 %v745_v48  ;;  %v1638_v48 = vld [vmem:[#allocation5 + $0x78] sm:$0xf] }
 0x302   :  { %1071 = vmatpush.bf16.msra.mxu3 %v1651_v47  ;;  %1099 = vmatpush.bf16.msrb.mxu1 %v1651_v47  ;;  %v1639_v51 = vor.u32 %v1833_v49, %v1638_v48  ;;  %v1698_v47 = vld [vmem:[#allocation5 + $0x80] sm:$0xf]  ;;  %v1847_v48 = vld [vmem:[#allocation5 + $0xa8] sm:$0xf0] }
 0x303   :  { %v1730_v49 = vld [vmem:[#allocation5 + $0x340] sm:$0xf]  ;;  %v1699_v50 = vor.u32 %v1847_v48, %v1698_v47 }
 0x304   :  { %1058 = vmatpush.bf16.msra.mxu2 %v1639_v51  ;;  %1086 = vmatpush.bf16.msrb.mxu0 %v1639_v51  ;;  %v1855_v51 = vld [vmem:[#allocation5 + $0x368] sm:$0xf0] }
 0x305   :  { %v1731_v52 = vor.u32 %v1855_v51, %v1730_v49 }
 0x306   :  { %1072 = vmatpush.bf16.msra.mxu3 %v1643_v53  ;;  %1100 = vmatpush.bf16.msrb.mxu1 %v1643_v53  ;;  %v1694_v53 = vld [vmem:[#allocation5 + $0x28] sm:$0xf] }
 0x307   :  { %v1695_v56 = vor.u32 %v1846_v54, %v1694_v53 }
 0x308   :  { %1059 = vmatpush.bf16.msra.mxu2 %v1631_v57  ;;  %1087 = vmatpush.bf16.msrb.mxu0 %v1631_v57  ;;  %v1854_v57 = vld [vmem:[#allocation5 + $0x310] sm:$0xf0] }
 0x309   :  { %v1727_v58 = vor.u32 %v1854_v57, %v1726_v55 }
 0x30a   :  { %1073 = vmatpush.bf16.msra.mxu3 %v1635_v59  ;;  %1101 = vmatpush.bf16.msrb.mxu1 %v1635_v59  ;;  %v966_v59 = vld [vmem:[#allocation7 + $0x8] sm:$0x3] }
 0x30b   :  { %v968_v62 = vperm.slane %v966_v59, 0 }
 0x30c   :  { %1252 = vmatpush.bf16.msrb.mxu2 %v1723_v63 }
 0x30e   :  { %1266 = vmatpush.bf16.msrb.mxu3 %v1755_v3 }
 0x310   :  { %1253 = vmatpush.bf16.msrb.mxu2 %v1719_v6 }
 0x312   :  { %1267 = vmatpush.bf16.msrb.mxu3 %v1751_v7 }
 0x314   :  { %1254 = vmatpush.bf16.msrb.mxu2 %v1715_v13 }
 0x318   :  { %1255 = vmatpush.bf16.msrb.mxu2 %v1711_v20 }
 0x378   :  { %v823_v11 = vpop.f32.mrf.mxu2 }
 0x379   :  { %v824_v22 = vadd.f32 %v1876_v15, %v823_v11  ;;  %v1746_v11 = vld [vmem:[#allocation5 + $0x4a0] sm:$0xf] }
 0x37b   :  { %v842_v26 = vmax.f32 %v824_v22, 0.0  ;;  %v1743_v22 = vor.u32 %v1858_v19, %v1742_v18 }
 0x380   :  { %v825_v24 = vpop.f32.mrf.mxu2 }
 0x381   :  { %v826_v25 = vadd.f32 %v1876_v15, %v825_v24 }
 0x383   :  { %v843_v27 = vmax.f32 %v826_v25, 0.0 }
 0x384   :  { %v837_v28 = vpop.f32.mrf.mxu3 }
 0x385   :  { %v846_v29 = vpack.c.bf16 %v843_v27, %v842_v26  ;;  %v838_v30 = vadd.f32 %v1876_v15, %v837_v28 }
 0x387   :  { %924 = vmatmul.bf16.vlgmr.msra.gmra.mxu0 %v846_v29  ;;  %v844_v33 = vmax.f32 %v838_v30, 0.0 }
 0x388   :  { %1280 = vmatpush.bf16.msra.mxu0 %v1723_v63  ;;  %v969_v63 = vperm.slane %v966_v59, 1 }
 0x38c   :  { %v839_v31 = vpop.f32.mrf.mxu3  ;;  %1281 = vmatpush.bf16.msra.mxu0 %v1719_v6 }
 0x38d   :  { %v840_v32 = vadd.f32 %v1876_v15, %v839_v31  ;;  %v1747_v15 = vor.u32 %v1859_v12, %v1746_v11 }
 0x38f   :  { %v845_v34 = vmax.f32 %v840_v32, 0.0  ;;  %1268 = vmatpush.bf16.msrb.mxu3 %v1747_v15 }
 0x390   :  { %1282 = vmatpush.bf16.msra.mxu0 %v1715_v13 }
 0x391   :  { %v847_v35 = vpack.c.bf16 %v845_v34, %v844_v33 }
 0x393   :  { %938 = vmatmul.bf16.vlgmr.msra.gmra.mxu1 %v847_v35  ;;  %1269 = vmatpush.bf16.msrb.mxu3 %v1743_v22  ;;  %v1706_v35 = vld [vmem:[#allocation5 + $0x130] sm:$0xf] }
 0x394   :  { %1294 = vmatpush.bf16.msra.mxu1 %v1755_v3  ;;  %1283 = vmatpush.bf16.msra.mxu0 %v1711_v20  ;;  %v1707_v38 = vor.u32 %v1849_v36, %v1706_v35 }
 0x396   :  { %1256 = vmatpush.bf16.msrb.mxu2 %v1707_v38 }
 0x397   :  { %1270 = vmatpush.bf16.msrb.mxu3 %v1739_v40 }
 0x398   :  { %1295 = vmatpush.bf16.msra.mxu1 %v1751_v7  ;;  %1284 = vmatpush.bf16.msra.mxu0 %v1707_v38 }
 0x39a   :  { %1257 = vmatpush.bf16.msrb.mxu2 %v1703_v44 }
 0x39b   :  { %1271 = vmatpush.bf16.msrb.mxu3 %v1735_v46 }
 0x39c   :  { %1296 = vmatpush.bf16.msra.mxu1 %v1747_v15  ;;  %1285 = vmatpush.bf16.msra.mxu0 %v1703_v44 }
 0x39e   :  { %1258 = vmatpush.bf16.msrb.mxu2 %v1699_v50 }
 0x39f   :  { %1272 = vmatpush.bf16.msrb.mxu3 %v1731_v52 }
 0x3a0   :  { %1297 = vmatpush.bf16.msra.mxu1 %v1743_v22  ;;  %1286 = vmatpush.bf16.msra.mxu0 %v1699_v50 }
 0x3a2   :  { %1259 = vmatpush.bf16.msrb.mxu2 %v1695_v56 }
 0x3a3   :  { %1273 = vmatpush.bf16.msrb.mxu3 %v1727_v58 }
 0x3a4   :  { %1298 = vmatpush.bf16.msra.mxu1 %v1739_v40  ;;  %1287 = vmatpush.bf16.msra.mxu0 %v1695_v56 }
 0x3a8   :  { %1299 = vmatpush.bf16.msra.mxu1 %v1735_v46 }
 0x3ac   :  { %1300 = vmatpush.bf16.msra.mxu1 %v1731_v52 }
 0x3b0   :  { %1301 = vmatpush.bf16.msra.mxu1 %v1727_v58 }
 0x404   :  { %v925_v10 = vpop.f32.mrf.mxu0 }
 0x405   :  { %v926_v21 = vadd.f32 %v1877_v14, %v925_v10 }
 0x407   :  { %v944_v25 = vmax.f32 %v926_v21, 0.0 }
 0x40c   :  { %v927_v23 = vpop.f32.mrf.mxu0 }
 0x40d   :  { %v928_v24 = vadd.f32 %v1877_v14, %v927_v23 }
 0x40f   :  { %v945_v26 = vmax.f32 %v928_v24, 0.0 }
 0x410   :  { %v939_v27 = vpop.f32.mrf.mxu1 }
 0x411   :  { %v948_v28 = vpack.c.bf16 %v945_v26, %v944_v25  ;;  %v940_v29 = vadd.f32 %v1877_v14, %v939_v27  ;;  %v1878_v26 = vld [vmem:[#allocation7 + $0xa] ss:$0 sm:$0xff] }
 0x413   :  { %1060 = vmatmul.bf16.vlgmr.msra.gmra.mxu2 %v948_v28  ;;  %1074 = vmatmul.bf16.vlgmr.msra.gmra.mxu3 %v948_v28  ;;  %v946_v32 = vmax.f32 %v940_v29, 0.0 }
 0x418   :  { %v941_v30 = vpop.f32.mrf.mxu1 }
 0x419   :  { %v942_v31 = vadd.f32 %v1877_v14, %v941_v30 }
 0x41b   :  { %v947_v33 = vmax.f32 %v942_v31, 0.0 }
 0x41d   :  { %v949_v34 = vpack.c.bf16 %v947_v33, %v946_v32 }
 0x41f   :  { %1088 = vmatmul.bf16.vlgmr.msrb.gmra.mxu0 %v949_v34  ;;  %1102 = vmatmul.bf16.vlgmr.msrb.gmra.mxu1 %v949_v34 }
 0x496   :  { %v1061_v60 = vpop.f32.mrf.mxu2  ;;  %v1075_v61 = vpop.f32.mrf.mxu3 }
 0x497   :  { %v1062_v2 = vadd.f32 %v1061_v60, %v968_v62  ;;  %v1076_v3 = vadd.f32 %v1075_v61, %v969_v63 }
 0x499   :  { %v1108_v8 = vmax.f32 %v1062_v2, 0.0  ;;  %v1109_v9 = vmax.f32 %v1076_v3, 0.0 }
 0x49c   :  { %v1089_v0 = vpop.f32.mrf.mxu0  ;;  %v1103_v1 = vpop.f32.mrf.mxu1 }
 0x49d   :  { %v1090_v12 = vadd.f32 %v1089_v0, %v968_v62  ;;  %v1104_v13 = vadd.f32 %v1103_v1, %v969_v63 }
 0x49e   :  { %v1063_v4 = vpop.f32.mrf.mxu2  ;;  %v1077_v5 = vpop.f32.mrf.mxu3 }
 0x49f   :  { %v1064_v6 = vadd.f32 %v1063_v4, %v968_v62  ;;  %v1078_v7 = vadd.f32 %v1077_v5, %v969_v63  ;;  %v1112_v20 = vmax.f32 %v1090_v12, 0.0  ;;  %v1113_v21 = vmax.f32 %v1104_v13, 0.0 }
 0x4a1   :  { %v1110_v10 = vmax.f32 %v1064_v6, 0.0  ;;  %v1111_v11 = vmax.f32 %v1078_v7, 0.0 }
 0x4a3   :  { %v1116_v14 = vpack.c.bf16 %v1110_v10, %v1108_v8  ;;  %v1117_v15 = vpack.c.bf16 %v1111_v11, %v1109_v9 }
 0x4a4   :  { %v1091_v16 = vpop.f32.mrf.mxu0  ;;  %v1105_v17 = vpop.f32.mrf.mxu1 }
 0x4a5   :  { %v1092_v18 = vadd.f32 %v1091_v16, %v968_v62  ;;  %v1106_v19 = vadd.f32 %v1105_v17, %v969_v63  ;;  %1260 = vmatmul.bf16.vlgmr.msrb.gmra.mxu2 %v1116_v14  ;;  %1274 = vmatmul.bf16.vlgmr.msrb.gmra.mxu3 %v1117_v15 }
 0x4a7   :  { %v1114_v22 = vmax.f32 %v1092_v18, 0.0  ;;  %v1115_v23 = vmax.f32 %v1106_v19, 0.0 }
 0x4a9   :  { %v1118_v24 = vpack.c.bf16 %v1114_v22, %v1112_v20  ;;  %v1119_v25 = vpack.c.bf16 %v1115_v23, %v1113_v21 }
 0x4ab   :  { %1288 = vmatmul.bf16.vlgmr.msra.gmra.mxu0 %v1118_v24  ;;  %1302 = vmatmul.bf16.vlgmr.msra.gmra.mxu1 %v1119_v25 }
 0x528   :  { %v1261_v27 = vpop.f32.mrf.mxu2  ;;  %v1275_v28 = vpop.f32.mrf.mxu3 }
 0x529   :  { %v1262_v29 = vadd.f32 %v1878_v26, %v1261_v27  ;;  %v1289_v30 = vpop.f32.mrf.mxu0  ;;  %v1303_v31 = vpop.f32.mrf.mxu1 }
 0x52a   :  { %v1290_v32 = vadd.f32 %v1878_v26, %v1289_v30 }
 0x52b   :  { %v1276_v33 = vadd.f32 %v1275_v28, %v1262_v29 }
 0x52c   :  { %v1304_v34 = vadd.f32 %v1303_v31, %v1290_v32 }
 0x52d   :  { %1308 = vst [vmem:[#allocation8] sm:$0xff] %v1276_v33 }
 0x52e   :  { %1310 = vst [vmem:[#allocation8 + $0x10] sm:$0xff] %v1304_v34 }
 0x530   :  { %v1263_v35 = vpop.f32.mrf.mxu2  ;;  %v1277_v38 = vpop.f32.mrf.mxu3 }
 0x531   :  { %v1264_v36 = vadd.f32 %v1878_v26, %v1263_v35  ;;  %v1291_v37 = vpop.f32.mrf.mxu0  ;;  %v1305_v41 = vpop.f32.mrf.mxu1 }
 0x532   :  { %v1292_v39 = vadd.f32 %v1878_v26, %v1291_v37 }
 0x533   :  { %v1278_v40 = vadd.f32 %v1277_v38, %v1264_v36 }
 0x534   :  { %v1306_v42 = vadd.f32 %v1305_v41, %v1292_v39 }
 0x535   :  { %1309 = vst [vmem:[#allocation8 + $0x8] sm:$0xff] %v1278_v40 }
 0x536   :  { %1311 = vst [vmem:[#allocation8 + $0x18] sm:$0xff] %v1306_v42 }
 0x537   :  { %1324 = dma.vmem_to_hbm [thread:$0]  %s1317_s2, 512, %s1319_s5, [#allocation4], %s1989_s6, %s1989_s6, %s1990_s7  }
 0x538   :  { %1979 = dma.done.wait [#allocation4], 512  }
 0x539   :  { %1980 = vsyncadd [#allocation4], 4294966784 }
 0x53a   :  { %1329 = vsyncpa [#allocation3], 1 }
 0x53b   :  { %1330 = vsyncpa [#allocation6], 1 }
 0x53c   :  { %1331 = vsyncpa [#allocation4], 1 }

</bundles_post_ra>
